<compile_context>
chip_gen: v6e
topology: v6e:2x2x1
jax: 0.10.0
libtpu: 0.0.40
codegen_flags: <defaults>
</compile_context>

<pallas_src>
import functools
import math

import jax
import jax.numpy as jnp
from jax import lax
from jax.experimental import pallas as pl
from jax.experimental.pallas import tpu as pltpu

_LN_EPS = 1e-5          # PyTorch nn.LayerNorm default eps
_MASK_FILL = -1e9       # matches masked_fill(mask == 0, -1000000000.0)


def _layer_norm(z, gamma, beta):
    mu = jnp.mean(z, axis=-1, keepdims=True)
    zc = z - mu
    var = jnp.mean(zc * zc, axis=-1, keepdims=True)
    return zc * lax.rsqrt(var + _LN_EPS) * gamma + beta


def _encoder_layer_kernel(
    # scalar prefetch (SMEM)
    valid_len_ref,                                   # (B,) int32
    # inputs
    x_ref,                                           # (S, D) f32
    wq_ref, bq_ref, wk_ref, bk_ref, wv_ref, bv_ref,  # (D,D) bf16 / (1,D) f32
    wo_ref, bo_ref,                                  # (D,D) bf16 / (1,D) f32
    g1_ref, beta1_ref,                               # LayerNorm1 affine (1,D) f32
    w1_ref, b1_ref, w2_ref, b2_ref,                  # FFN: (D,d_ff)/(1,d_ff)/(d_ff,D)/(1,D)
    g2_ref, beta2_ref,                               # LayerNorm2 affine (1,D) f32
    # output
    o_ref,                                           # (S, D) f32
    # scratch
    q_scr, k_scr, v_scr, ctx_scr,                    # (S, D) f32 VMEM
    *, num_heads: int, head_dim: int, seq_len: int,
):
    b = pl.program_id(0)
    x = x_ref[...]                       # (S, D) f32: kept in f32 for residual / LN
    xb = x.astype(jnp.bfloat16)          # bf16 operand for the MXU

    # --- full-width QKV projections (one (S,D)x(D,D) matmul each, f32 acc) ---
    # 1/sqrt(head_dim) is already folded into wq/bq by the wrapper.
    q_scr[...] = jnp.dot(xb, wq_ref[...], preferred_element_type=jnp.float32) + bq_ref[...]
    k_scr[...] = jnp.dot(xb, wk_ref[...], preferred_element_type=jnp.float32) + bk_ref[...]
    v_scr[...] = jnp.dot(xb, wv_ref[...], preferred_element_type=jnp.float32) + bv_ref[...]

    # --- head-invariant key-padding mask, built ONCE (hoisted out of the loop) ---
    key_valid = lax.broadcasted_iota(jnp.int32, (1, seq_len), 1) < valid_len_ref[b]
    key_valid = jnp.broadcast_to(key_valid, (seq_len, seq_len))        # (S, S) bool

    # --- per-head attention core (contraction dim = head_dim is inherent) ---
    for h in range(num_heads):
        sl = pl.ds(h * head_dim, head_dim)
        qh = q_scr[:, sl].astype(jnp.bfloat16)       # (S, hd)
        kh = k_scr[:, sl].astype(jnp.bfloat16)
        vh = v_scr[:, sl].astype(jnp.bfloat16)

        scores = lax.dot_general(qh, kh, (((1,), (1,)), ((), ())),
                                 preferred_element_type=jnp.float32)   # (S, S)
        scores = jnp.where(key_valid, scores, _MASK_FILL)

        s_max = jnp.max(scores, axis=-1, keepdims=True)
        p = jnp.exp(scores - s_max)                                    # EUP slot
        inv = pl.reciprocal(jnp.sum(p, axis=-1, keepdims=True), approx=True)
        attn = (p * inv).astype(jnp.bfloat16)

        # stage this head's context at lane offset h*hd of the (S, D) scratch
        ctx_scr[:, sl] = jnp.dot(attn, vh, preferred_element_type=jnp.float32)

    # --- output projection: ONE full (S,D)x(D,D) matmul ---
    attn_out = (jnp.dot(ctx_scr[...].astype(jnp.bfloat16), wo_ref[...],
                        preferred_element_type=jnp.float32) + bo_ref[...])

    y1 = _layer_norm(x + attn_out, g1_ref[...], beta1_ref[...])        # f32

    # --- feed-forward: relu(y1 @ W1 + b1) @ W2 + b2 (bf16 operands, f32 acc) ---
    h1 = jnp.maximum(
        jnp.dot(y1.astype(jnp.bfloat16), w1_ref[...],
                preferred_element_type=jnp.float32) + b1_ref[...], 0.0)
    ff = (jnp.dot(h1.astype(jnp.bfloat16), w2_ref[...],
                  preferred_element_type=jnp.float32) + b2_ref[...])

    y2 = _layer_norm(y1 + ff, g2_ref[...], beta2_ref[...])
    o_ref[...] = y2.astype(o_ref.dtype)


def encoder_layer_forward(x, valid_len, params, num_heads):
    """x: (B, S, D) f32.  valid_len: (B,) int32 — number of valid key
    positions per batch row (key-padding mask).  Weights in (in, out) layout
    (already transposed vs. torch nn.Linear.weight)."""
    B, S, D = x.shape
    assert D % num_heads == 0
    hd = D // num_heads
    d_ff = params["w1"].shape[1]
    inv_sqrt_hd = 1.0 / math.sqrt(hd)

    bf16 = jnp.bfloat16
    # fold the 1/sqrt(head_dim) attention scale into the query projection
    wq = (params["wq"] * inv_sqrt_hd).astype(bf16)
    bq = params["bq"] * inv_sqrt_hd                       # bias stays f32
    wk = params["wk"].astype(bf16)
    wv = params["wv"].astype(bf16)
    wo = params["wo"].astype(bf16)
    w1 = params["w1"].astype(bf16)
    w2 = params["w2"].astype(bf16)

    def full_spec(shape):
        # whole-array block, constant block index -> DMA'd once, reused across grid.
        nd = len(shape)
        return pl.BlockSpec(shape, lambda b, vlen, _nd=nd: (0,) * _nd)

    in_specs = [
        pl.BlockSpec((pl.Squeezed(), S, D), lambda b, vlen: (b, 0, 0)),   # x
        full_spec((D, D)), full_spec((1, D)),          # wq, bq
        full_spec((D, D)), full_spec((1, D)),          # wk, bk
        full_spec((D, D)), full_spec((1, D)),          # wv, bv
        full_spec((D, D)), full_spec((1, D)),          # wo, bo
        full_spec((1, D)), full_spec((1, D)),          # gamma1, beta1
        full_spec((D, d_ff)), full_spec((1, d_ff)),    # w1, b1
        full_spec((d_ff, D)), full_spec((1, D)),       # w2, b2
        full_spec((1, D)), full_spec((1, D)),          # gamma2, beta2
    ]
    out_specs = pl.BlockSpec((pl.Squeezed(), S, D), lambda b, vlen: (b, 0, 0))

    kernel = functools.partial(
        _encoder_layer_kernel, num_heads=num_heads, head_dim=hd, seq_len=S)

    return pl.pallas_call(
        kernel,
        out_shape=jax.ShapeDtypeStruct((B, S, D), x.dtype),
        grid_spec=pltpu.PrefetchScalarGridSpec(
            num_scalar_prefetch=1,           # valid_len -> SMEM
            grid=(B,),
            in_specs=in_specs,
            out_specs=out_specs,
            scratch_shapes=[pltpu.VMEM((S, D), jnp.float32)] * 4,   # q, k, v, ctx
        ),
        compiler_params=pltpu.CompilerParams(
            dimension_semantics=("parallel",),
            vmem_limit_bytes=64 * 1024 * 1024),
    )(valid_len.astype(jnp.int32), x,
      wq, bq, wk, params["bk"], wv, params["bv"], wo, params["bo"],
      params["g1"], params["beta1"],
      w1, params["b1"], w2, params["b2"],
      params["g2"], params["beta2"])


# ----------------------------- pure-JAX reference -----------------------------
def encoder_layer_reference(x, mask, params, num_heads):
    B, S, D = x.shape
    hd = D // num_heads

    def linear(z, w, b):
        return jnp.dot(z, w) + b

    q = linear(x, params["wq"], params["bq"]).reshape(B, S, num_heads, hd).transpose(0, 2, 1, 3)
    k = linear(x, params["wk"], params["bk"]).reshape(B, S, num_heads, hd).transpose(0, 2, 1, 3)
    v = linear(x, params["wv"], params["bv"]).reshape(B, S, num_heads, hd).transpose(0, 2, 1, 3)
    scores = jnp.einsum("bhqd,bhkd->bhqk", q, k) / math.sqrt(hd)
    scores = jnp.where(mask[:, None, :, :] == 0.0, _MASK_FILL, scores)
    attn = jax.nn.softmax(scores, axis=-1)
    ctx = jnp.einsum("bhqk,bhkd->bhqd", attn, v).transpose(0, 2, 1, 3).reshape(B, S, D)
    attn_out = linear(ctx, params["wo"], params["bo"])

    def ln(z, g, b):
        mu = z.mean(-1, keepdims=True)
        var = ((z - mu) ** 2).mean(-1, keepdims=True)
        return (z - mu) / jnp.sqrt(var + _LN_EPS) * g + b

    y1 = ln(x + attn_out, params["g1"], params["beta1"])
    h1 = jax.nn.relu(linear(y1, params["w1"], params["b1"]))
    ff = linear(h1, params["w2"], params["b2"])
    return ln(y1 + ff, params["g2"], params["beta2"])


if __name__ == "__main__":
    B, S, D, H, D_FF = 2, 8, 32, 4, 64

    keys = jax.random.split(jax.random.PRNGKey(0), 18)

    def w(key, shape, scale=0.05):
        return (scale * jax.random.normal(key, shape)).astype(jnp.float32)

    params = {
        "wq": w(keys[0], (D, D)), "bq": w(keys[1], (1, D)),
        "wk": w(keys[2], (D, D)), "bk": w(keys[3], (1, D)),
        "wv": w(keys[4], (D, D)), "bv": w(keys[5], (1, D)),
        "wo": w(keys[6], (D, D)), "bo": w(keys[7], (1, D)),
        "g1": 1.0 + w(keys[8], (1, D)), "beta1": w(keys[9], (1, D)),
        "w1": w(keys[10], (D, D_FF)), "b1": w(keys[11], (1, D_FF)),
        "w2": w(keys[12], (D_FF, D)), "b2": w(keys[13], (1, D)),
        "g2": 1.0 + w(keys[14], (1, D)), "beta2": w(keys[15], (1, D)),
    }

    x = jax.random.normal(keys[16], (B, S, D), dtype=jnp.float32)

    # padding-style mask: batch 0 attends to all 8 keys, batch 1 only first 6.
    valid_len = jnp.array([S, S - 2], dtype=jnp.int32)
    key_pos = jnp.arange(S, dtype=jnp.int32)
    mask = (key_pos[None, None, :] < valid_len[:, None, None]).astype(jnp.float32)
    mask = jnp.broadcast_to(mask, (B, S, S)).astype(jnp.float32)

    out = encoder_layer_forward(x, valid_len, params, num_heads=H)
    out = jax.block_until_ready(out)

    ref = encoder_layer_reference(x, mask, params, num_heads=H)
    assert out.shape == (B, S, D)
    err = float(jnp.max(jnp.abs(out - ref)))
    # bf16 matmul operands (f32 accumulation) + approx reciprocal -> looser tol
    # than the pure-f32 reference.
    assert jnp.allclose(out, ref, atol=3e-2, rtol=3e-2), f"max abs err {err}"

    print("KERNEL_OK")
</pallas_src>

<mosaic_0001>
module attributes {stable_mosaic.version = 11 : i64} {
  func.func @_encoder_layer_kernel(%arg0: i32, %arg1: memref<2xi32, #tpu.memory_space<smem>>, %arg2: memref<1x8x32xf32, #tpu.memory_space<vmem>>, %arg3: memref<32x32xbf16, #tpu.memory_space<vmem>>, %arg4: memref<1x32xf32, #tpu.memory_space<vmem>>, %arg5: memref<32x32xbf16, #tpu.memory_space<vmem>>, %arg6: memref<1x32xf32, #tpu.memory_space<vmem>>, %arg7: memref<32x32xbf16, #tpu.memory_space<vmem>>, %arg8: memref<1x32xf32, #tpu.memory_space<vmem>>, %arg9: memref<32x32xbf16, #tpu.memory_space<vmem>>, %arg10: memref<1x32xf32, #tpu.memory_space<vmem>>, %arg11: memref<1x32xf32, #tpu.memory_space<vmem>>, %arg12: memref<1x32xf32, #tpu.memory_space<vmem>>, %arg13: memref<32x64xbf16, #tpu.memory_space<vmem>>, %arg14: memref<1x64xf32, #tpu.memory_space<vmem>>, %arg15: memref<64x32xbf16, #tpu.memory_space<vmem>>, %arg16: memref<1x32xf32, #tpu.memory_space<vmem>>, %arg17: memref<1x32xf32, #tpu.memory_space<vmem>>, %arg18: memref<1x32xf32, #tpu.memory_space<vmem>>, %arg19: memref<1x8x32xf32, #tpu.memory_space<vmem>>, %arg20: memref<8x32xf32, #tpu.memory_space<vmem>>, %arg21: memref<8x32xf32, #tpu.memory_space<vmem>>, %arg22: memref<8x32xf32, #tpu.memory_space<vmem>>, %arg23: memref<8x32xf32, #tpu.memory_space<vmem>>) attributes {dimension_semantics = [#tpu.dimension_semantics<parallel>], iteration_bounds = array<i64: 2>, scalar_prefetch = 1 : i64, scratch_operands = 4 : i64, tpu.core_type = #tpu.core_type<tc>, window_params = [{transform_indices = @transform_0, window_bounds = array<i64: 1, 8, 32>}, {pipeline_mode = #tpu.pipeline_mode<synchronous>, transform_indices = @transform_1, window_bounds = array<i64: 32, 32>}, {pipeline_mode = #tpu.pipeline_mode<synchronous>, transform_indices = @transform_2, window_bounds = array<i64: 1, 32>}, {pipeline_mode = #tpu.pipeline_mode<synchronous>, transform_indices = @transform_3, window_bounds = array<i64: 32, 32>}, {pipeline_mode = #tpu.pipeline_mode<synchronous>, transform_indices = @transform_4, window_bounds = array<i64: 1, 32>}, {pipeline_mode = #tpu.pipeline_mode<synchronous>, transform_indices = @transform_5, window_bounds = array<i64: 32, 32>}, {pipeline_mode = #tpu.pipeline_mode<synchronous>, transform_indices = @transform_6, window_bounds = array<i64: 1, 32>}, {pipeline_mode = #tpu.pipeline_mode<synchronous>, transform_indices = @transform_7, window_bounds = array<i64: 32, 32>}, {pipeline_mode = #tpu.pipeline_mode<synchronous>, transform_indices = @transform_8, window_bounds = array<i64: 1, 32>}, {pipeline_mode = #tpu.pipeline_mode<synchronous>, transform_indices = @transform_9, window_bounds = array<i64: 1, 32>}, {pipeline_mode = #tpu.pipeline_mode<synchronous>, transform_indices = @transform_10, window_bounds = array<i64: 1, 32>}, {pipeline_mode = #tpu.pipeline_mode<synchronous>, transform_indices = @transform_11, window_bounds = array<i64: 32, 64>}, {pipeline_mode = #tpu.pipeline_mode<synchronous>, transform_indices = @transform_12, window_bounds = array<i64: 1, 64>}, {pipeline_mode = #tpu.pipeline_mode<synchronous>, transform_indices = @transform_13, window_bounds = array<i64: 64, 32>}, {pipeline_mode = #tpu.pipeline_mode<synchronous>, transform_indices = @transform_14, window_bounds = array<i64: 1, 32>}, {pipeline_mode = #tpu.pipeline_mode<synchronous>, transform_indices = @transform_15, window_bounds = array<i64: 1, 32>}, {pipeline_mode = #tpu.pipeline_mode<synchronous>, transform_indices = @transform_16, window_bounds = array<i64: 1, 32>}, {transform_indices = @transform_17, window_bounds = array<i64: 1, 8, 32>}]} {
    %c0 = arith.constant 0 : index
    %c0_0 = arith.constant 0 : index
    %c0_1 = arith.constant 0 : index
    %0 = vector.load %arg2[%c0, %c0_0, %c0_1] : memref<1x8x32xf32, #tpu.memory_space<vmem>>, vector<1x8x32xf32>
    %1 = vector.shape_cast %0 : vector<1x8x32xf32> to vector<8x32xf32>
    %2 = arith.truncf %1 : vector<8x32xf32> to vector<8x32xbf16>
    %c0_2 = arith.constant 0 : index
    %c0_3 = arith.constant 0 : index
    %3 = vector.load %arg3[%c0_2, %c0_3] : memref<32x32xbf16, #tpu.memory_space<vmem>>, vector<32x32xbf16>
    %cst = arith.constant dense<0.000000e+00> : vector<8x32xf32>
    %4 = tpu.matmul %2, %3, %cst {dimension_numbers = #tpu.dot_dimension_numbers<[1], [0], [0], [1], [0, 0, 1, 1], [], []>} : vector<8x32xbf16>, vector<32x32xbf16>, vector<8x32xf32> -> vector<8x32xf32>
    %c0_4 = arith.constant 0 : index
    %c0_5 = arith.constant 0 : index
    %5 = vector.load %arg4[%c0_4, %c0_5] : memref<1x32xf32, #tpu.memory_space<vmem>>, vector<1x32xf32>
    %6 = vector.broadcast %5 : vector<1x32xf32> to vector<8x32xf32>
    %7 = arith.addf %4, %6 : vector<8x32xf32>
    %c0_6 = arith.constant 0 : index
    %c0_7 = arith.constant 0 : index
    %8 = vector.load %arg20[%c0_6, %c0_7] : memref<8x32xf32, #tpu.memory_space<vmem>>, vector<8x32xf32>
    tpu.vector_store %arg20[%c0_6, %c0_7], %7 {strides = array<i32>} : memref<8x32xf32, #tpu.memory_space<vmem>>, vector<8x32xf32>,
    %c0_8 = arith.constant 0 : index
    %c0_9 = arith.constant 0 : index
    %9 = vector.load %arg5[%c0_8, %c0_9] : memref<32x32xbf16, #tpu.memory_space<vmem>>, vector<32x32xbf16>
    %cst_10 = arith.constant dense<0.000000e+00> : vector<8x32xf32>
    %10 = tpu.matmul %2, %9, %cst_10 {dimension_numbers = #tpu.dot_dimension_numbers<[1], [0], [0], [1], [0, 0, 1, 1], [], []>} : vector<8x32xbf16>, vector<32x32xbf16>, vector<8x32xf32> -> vector<8x32xf32>
    %c0_11 = arith.constant 0 : index
    %c0_12 = arith.constant 0 : index
    %11 = vector.load %arg6[%c0_11, %c0_12] : memref<1x32xf32, #tpu.memory_space<vmem>>, vector<1x32xf32>
    %12 = vector.broadcast %11 : vector<1x32xf32> to vector<8x32xf32>
    %13 = arith.addf %10, %12 : vector<8x32xf32>
    %c0_13 = arith.constant 0 : index
    %c0_14 = arith.constant 0 : index
    %14 = vector.load %arg21[%c0_13, %c0_14] : memref<8x32xf32, #tpu.memory_space<vmem>>, vector<8x32xf32>
    tpu.vector_store %arg21[%c0_13, %c0_14], %13 {strides = array<i32>} : memref<8x32xf32, #tpu.memory_space<vmem>>, vector<8x32xf32>,
    %c0_15 = arith.constant 0 : index
    %c0_16 = arith.constant 0 : index
    %15 = vector.load %arg7[%c0_15, %c0_16] : memref<32x32xbf16, #tpu.memory_space<vmem>>, vector<32x32xbf16>
    %cst_17 = arith.constant dense<0.000000e+00> : vector<8x32xf32>
    %16 = tpu.matmul %2, %15, %cst_17 {dimension_numbers = #tpu.dot_dimension_numbers<[1], [0], [0], [1], [0, 0, 1, 1], [], []>} : vector<8x32xbf16>, vector<32x32xbf16>, vector<8x32xf32> -> vector<8x32xf32>
    %c0_18 = arith.constant 0 : index
    %c0_19 = arith.constant 0 : index
    %17 = vector.load %arg8[%c0_18, %c0_19] : memref<1x32xf32, #tpu.memory_space<vmem>>, vector<1x32xf32>
    %18 = vector.broadcast %17 : vector<1x32xf32> to vector<8x32xf32>
    %19 = arith.addf %16, %18 : vector<8x32xf32>
    %c0_20 = arith.constant 0 : index
    %c0_21 = arith.constant 0 : index
    %20 = vector.load %arg22[%c0_20, %c0_21] : memref<8x32xf32, #tpu.memory_space<vmem>>, vector<8x32xf32>
    tpu.vector_store %arg22[%c0_20, %c0_21], %19 {strides = array<i32>} : memref<8x32xf32, #tpu.memory_space<vmem>>, vector<8x32xf32>,
    %21 = tpu.iota {dimensions = array<i32: 1>} : vector<1x8xi32>
    %22 = arith.index_cast %arg0 : i32 to index
    %23 = memref.load %arg1[%22] : memref<2xi32, #tpu.memory_space<smem>>
    %24 = vector.broadcast %23 : i32 to vector<1x8xi32>
    %25 = arith.cmpi slt, %21, %24 : vector<1x8xi32>
    %26 = vector.shape_cast %25 : vector<1x8xi1> to vector<1x8xi1>
    %27 = vector.broadcast %26 : vector<1x8xi1> to vector<8x8xi1>
    %c0_22 = arith.constant 0 : index
    %c0_23 = arith.constant 0 : index
    %28 = vector.load %arg20[%c0_22, %c0_23] : memref<8x32xf32, #tpu.memory_space<vmem>>, vector<8x8xf32>
    %29 = arith.truncf %28 : vector<8x8xf32> to vector<8x8xbf16>
    %c0_24 = arith.constant 0 : index
    %c0_25 = arith.constant 0 : index
    %30 = vector.load %arg21[%c0_24, %c0_25] : memref<8x32xf32, #tpu.memory_space<vmem>>, vector<8x8xf32>
    %31 = arith.truncf %30 : vector<8x8xf32> to vector<8x8xbf16>
    %c0_26 = arith.constant 0 : index
    %c0_27 = arith.constant 0 : index
    %32 = vector.load %arg22[%c0_26, %c0_27] : memref<8x32xf32, #tpu.memory_space<vmem>>, vector<8x8xf32>
    %33 = arith.truncf %32 : vector<8x8xf32> to vector<8x8xbf16>
    %cst_28 = arith.constant dense<0.000000e+00> : vector<8x8xf32>
    %34 = tpu.matmul %29, %31, %cst_28 {dimension_numbers = #tpu.dot_dimension_numbers<[1], [1], [0], [0], [0, 0, 1, 0], [], []>} : vector<8x8xbf16>, vector<8x8xbf16>, vector<8x8xf32> -> vector<8x8xf32>
    %cst_29 = arith.constant -1.000000e+09 : f32
    %35 = vector.broadcast %cst_29 : f32 to vector<8x8xf32>
    %36 = arith.select %27, %34, %35 : vector<8x8xi1>, vector<8x8xf32>
    %cst_30 = arith.constant dense<0xFF800000> : vector<8xf32>
    %37 = vector.multi_reduction <maximumf>, %36, %cst_30 [1] : vector<8x8xf32> to vector<8xf32>
    %38 = vector.shape_cast %37 : vector<8xf32> to vector<8x1xf32>
    %39 = vector.broadcast %38 : vector<8x1xf32> to vector<8x8xf32>
    %40 = arith.subf %36, %39 : vector<8x8xf32>
    %41 = math.exp %40 : vector<8x8xf32>
    %cst_31 = arith.constant dense<0.000000e+00> : vector<8xf32>
    %42 = vector.multi_reduction <add>, %41, %cst_31 [1] : vector<8x8xf32> to vector<8xf32>
    %43 = vector.shape_cast %42 : vector<8xf32> to vector<8x1xf32>
    %44 = tpu.reciprocal %43 {approx = true} : vector<8x1xf32> -> vector<8x1xf32>
    %45 = vector.broadcast %44 : vector<8x1xf32> to vector<8x8xf32>
    %46 = arith.mulf %41, %45 : vector<8x8xf32>
    %47 = arith.truncf %46 : vector<8x8xf32> to vector<8x8xbf16>
    %cst_32 = arith.constant dense<0.000000e+00> : vector<8x8xf32>
    %48 = tpu.matmul %47, %33, %cst_32 {dimension_numbers = #tpu.dot_dimension_numbers<[1], [0], [0], [1], [0, 0, 1, 1], [], []>} : vector<8x8xbf16>, vector<8x8xbf16>, vector<8x8xf32> -> vector<8x8xf32>
    %c0_33 = arith.constant 0 : index
    %c0_34 = arith.constant 0 : index
    %49 = vector.load %arg23[%c0_33, %c0_34] : memref<8x32xf32, #tpu.memory_space<vmem>>, vector<8x8xf32>
    tpu.vector_store %arg23[%c0_33, %c0_34], %48 {strides = array<i32>} : memref<8x32xf32, #tpu.memory_space<vmem>>, vector<8x8xf32>,
    %c0_35 = arith.constant 0 : index
    %c8 = arith.constant 8 : index
    %50 = vector.load %arg20[%c0_35, %c8] : memref<8x32xf32, #tpu.memory_space<vmem>>, vector<8x8xf32>
    %51 = arith.truncf %50 : vector<8x8xf32> to vector<8x8xbf16>
    %c0_36 = arith.constant 0 : index
    %c8_37 = arith.constant 8 : index
    %52 = vector.load %arg21[%c0_36, %c8_37] : memref<8x32xf32, #tpu.memory_space<vmem>>, vector<8x8xf32>
    %53 = arith.truncf %52 : vector<8x8xf32> to vector<8x8xbf16>
    %c0_38 = arith.constant 0 : index
    %c8_39 = arith.constant 8 : index
    %54 = vector.load %arg22[%c0_38, %c8_39] : memref<8x32xf32, #tpu.memory_space<vmem>>, vector<8x8xf32>
    %55 = arith.truncf %54 : vector<8x8xf32> to vector<8x8xbf16>
    %cst_40 = arith.constant dense<0.000000e+00> : vector<8x8xf32>
    %56 = tpu.matmul %51, %53, %cst_40 {dimension_numbers = #tpu.dot_dimension_numbers<[1], [1], [0], [0], [0, 0, 1, 0], [], []>} : vector<8x8xbf16>, vector<8x8xbf16>, vector<8x8xf32> -> vector<8x8xf32>
    %cst_41 = arith.constant -1.000000e+09 : f32
    %57 = vector.broadcast %cst_41 : f32 to vector<8x8xf32>
    %58 = arith.select %27, %56, %57 : vector<8x8xi1>, vector<8x8xf32>
    %cst_42 = arith.constant dense<0xFF800000> : vector<8xf32>
    %59 = vector.multi_reduction <maximumf>, %58, %cst_42 [1] : vector<8x8xf32> to vector<8xf32>
    %60 = vector.shape_cast %59 : vector<8xf32> to vector<8x1xf32>
    %61 = vector.broadcast %60 : vector<8x1xf32> to vector<8x8xf32>
    %62 = arith.subf %58, %61 : vector<8x8xf32>
    %63 = math.exp %62 : vector<8x8xf32>
    %cst_43 = arith.constant dense<0.000000e+00> : vector<8xf32>
    %64 = vector.multi_reduction <add>, %63, %cst_43 [1] : vector<8x8xf32> to vector<8xf32>
    %65 = vector.shape_cast %64 : vector<8xf32> to vector<8x1xf32>
    %66 = tpu.reciprocal %65 {approx = true} : vector<8x1xf32> -> vector<8x1xf32>
    %67 = vector.broadcast %66 : vector<8x1xf32> to vector<8x8xf32>
    %68 = arith.mulf %63, %67 : vector<8x8xf32>
    %69 = arith.truncf %68 : vector<8x8xf32> to vector<8x8xbf16>
    %cst_44 = arith.constant dense<0.000000e+00> : vector<8x8xf32>
    %70 = tpu.matmul %69, %55, %cst_44 {dimension_numbers = #tpu.dot_dimension_numbers<[1], [0], [0], [1], [0, 0, 1, 1], [], []>} : vector<8x8xbf16>, vector<8x8xbf16>, vector<8x8xf32> -> vector<8x8xf32>
    %c0_45 = arith.constant 0 : index
    %c8_46 = arith.constant 8 : index
    %71 = vector.load %arg23[%c0_45, %c8_46] : memref<8x32xf32, #tpu.memory_space<vmem>>, vector<8x8xf32>
    tpu.vector_store %arg23[%c0_45, %c8_46], %70 {strides = array<i32>} : memref<8x32xf32, #tpu.memory_space<vmem>>, vector<8x8xf32>,
    %c0_47 = arith.constant 0 : index
    %c16 = arith.constant 16 : index
    %72 = vector.load %arg20[%c0_47, %c16] : memref<8x32xf32, #tpu.memory_space<vmem>>, vector<8x8xf32>
    %73 = arith.truncf %72 : vector<8x8xf32> to vector<8x8xbf16>
    %c0_48 = arith.constant 0 : index
    %c16_49 = arith.constant 16 : index
    %74 = vector.load %arg21[%c0_48, %c16_49] : memref<8x32xf32, #tpu.memory_space<vmem>>, vector<8x8xf32>
    %75 = arith.truncf %74 : vector<8x8xf32> to vector<8x8xbf16>
    %c0_50 = arith.constant 0 : index
    %c16_51 = arith.constant 16 : index
    %76 = vector.load %arg22[%c0_50, %c16_51] : memref<8x32xf32, #tpu.memory_space<vmem>>, vector<8x8xf32>
    %77 = arith.truncf %76 : vector<8x8xf32> to vector<8x8xbf16>
    %cst_52 = arith.constant dense<0.000000e+00> : vector<8x8xf32>
    %78 = tpu.matmul %73, %75, %cst_52 {dimension_numbers = #tpu.dot_dimension_numbers<[1], [1], [0], [0], [0, 0, 1, 0], [], []>} : vector<8x8xbf16>, vector<8x8xbf16>, vector<8x8xf32> -> vector<8x8xf32>
    %cst_53 = arith.constant -1.000000e+09 : f32
    %79 = vector.broadcast %cst_53 : f32 to vector<8x8xf32>
    %80 = arith.select %27, %78, %79 : vector<8x8xi1>, vector<8x8xf32>
    %cst_54 = arith.constant dense<0xFF800000> : vector<8xf32>
    %81 = vector.multi_reduction <maximumf>, %80, %cst_54 [1] : vector<8x8xf32> to vector<8xf32>
    %82 = vector.shape_cast %81 : vector<8xf32> to vector<8x1xf32>
    %83 = vector.broadcast %82 : vector<8x1xf32> to vector<8x8xf32>
    %84 = arith.subf %80, %83 : vector<8x8xf32>
    %85 = math.exp %84 : vector<8x8xf32>
    %cst_55 = arith.constant dense<0.000000e+00> : vector<8xf32>
    %86 = vector.multi_reduction <add>, %85, %cst_55 [1] : vector<8x8xf32> to vector<8xf32>
    %87 = vector.shape_cast %86 : vector<8xf32> to vector<8x1xf32>
    %88 = tpu.reciprocal %87 {approx = true} : vector<8x1xf32> -> vector<8x1xf32>
    %89 = vector.broadcast %88 : vector<8x1xf32> to vector<8x8xf32>
    %90 = arith.mulf %85, %89 : vector<8x8xf32>
    %91 = arith.truncf %90 : vector<8x8xf32> to vector<8x8xbf16>
    %cst_56 = arith.constant dense<0.000000e+00> : vector<8x8xf32>
    %92 = tpu.matmul %91, %77, %cst_56 {dimension_numbers = #tpu.dot_dimension_numbers<[1], [0], [0], [1], [0, 0, 1, 1], [], []>} : vector<8x8xbf16>, vector<8x8xbf16>, vector<8x8xf32> -> vector<8x8xf32>
    %c0_57 = arith.constant 0 : index
    %c16_58 = arith.constant 16 : index
    %93 = vector.load %arg23[%c0_57, %c16_58] : memref<8x32xf32, #tpu.memory_space<vmem>>, vector<8x8xf32>
    tpu.vector_store %arg23[%c0_57, %c16_58], %92 {strides = array<i32>} : memref<8x32xf32, #tpu.memory_space<vmem>>, vector<8x8xf32>,
    %c0_59 = arith.constant 0 : index
    %c24 = arith.constant 24 : index
    %94 = vector.load %arg20[%c0_59, %c24] : memref<8x32xf32, #tpu.memory_space<vmem>>, vector<8x8xf32>
    %95 = arith.truncf %94 : vector<8x8xf32> to vector<8x8xbf16>
    %c0_60 = arith.constant 0 : index
    %c24_61 = arith.constant 24 : index
    %96 = vector.load %arg21[%c0_60, %c24_61] : memref<8x32xf32, #tpu.memory_space<vmem>>, vector<8x8xf32>
    %97 = arith.truncf %96 : vector<8x8xf32> to vector<8x8xbf16>
    %c0_62 = arith.constant 0 : index
    %c24_63 = arith.constant 24 : index
    %98 = vector.load %arg22[%c0_62, %c24_63] : memref<8x32xf32, #tpu.memory_space<vmem>>, vector<8x8xf32>
    %99 = arith.truncf %98 : vector<8x8xf32> to vector<8x8xbf16>
    %cst_64 = arith.constant dense<0.000000e+00> : vector<8x8xf32>
    %100 = tpu.matmul %95, %97, %cst_64 {dimension_numbers = #tpu.dot_dimension_numbers<[1], [1], [0], [0], [0, 0, 1, 0], [], []>} : vector<8x8xbf16>, vector<8x8xbf16>, vector<8x8xf32> -> vector<8x8xf32>
    %cst_65 = arith.constant -1.000000e+09 : f32
    %101 = vector.broadcast %cst_65 : f32 to vector<8x8xf32>
    %102 = arith.select %27, %100, %101 : vector<8x8xi1>, vector<8x8xf32>
    %cst_66 = arith.constant dense<0xFF800000> : vector<8xf32>
    %103 = vector.multi_reduction <maximumf>, %102, %cst_66 [1] : vector<8x8xf32> to vector<8xf32>
    %104 = vector.shape_cast %103 : vector<8xf32> to vector<8x1xf32>
    %105 = vector.broadcast %104 : vector<8x1xf32> to vector<8x8xf32>
    %106 = arith.subf %102, %105 : vector<8x8xf32>
    %107 = math.exp %106 : vector<8x8xf32>
    %cst_67 = arith.constant dense<0.000000e+00> : vector<8xf32>
    %108 = vector.multi_reduction <add>, %107, %cst_67 [1] : vector<8x8xf32> to vector<8xf32>
    %109 = vector.shape_cast %108 : vector<8xf32> to vector<8x1xf32>
    %110 = tpu.reciprocal %109 {approx = true} : vector<8x1xf32> -> vector<8x1xf32>
    %111 = vector.broadcast %110 : vector<8x1xf32> to vector<8x8xf32>
    %112 = arith.mulf %107, %111 : vector<8x8xf32>
    %113 = arith.truncf %112 : vector<8x8xf32> to vector<8x8xbf16>
    %cst_68 = arith.constant dense<0.000000e+00> : vector<8x8xf32>
    %114 = tpu.matmul %113, %99, %cst_68 {dimension_numbers = #tpu.dot_dimension_numbers<[1], [0], [0], [1], [0, 0, 1, 1], [], []>} : vector<8x8xbf16>, vector<8x8xbf16>, vector<8x8xf32> -> vector<8x8xf32>
    %c0_69 = arith.constant 0 : index
    %c24_70 = arith.constant 24 : index
    %115 = vector.load %arg23[%c0_69, %c24_70] : memref<8x32xf32, #tpu.memory_space<vmem>>, vector<8x8xf32>
    tpu.vector_store %arg23[%c0_69, %c24_70], %114 {strides = array<i32>} : memref<8x32xf32, #tpu.memory_space<vmem>>, vector<8x8xf32>,
    %c0_71 = arith.constant 0 : index
    %c0_72 = arith.constant 0 : index
    %116 = vector.load %arg23[%c0_71, %c0_72] : memref<8x32xf32, #tpu.memory_space<vmem>>, vector<8x32xf32>
    %117 = arith.truncf %116 : vector<8x32xf32> to vector<8x32xbf16>
    %c0_73 = arith.constant 0 : index
    %c0_74 = arith.constant 0 : index
    %118 = vector.load %arg9[%c0_73, %c0_74] : memref<32x32xbf16, #tpu.memory_space<vmem>>, vector<32x32xbf16>
    %cst_75 = arith.constant dense<0.000000e+00> : vector<8x32xf32>
    %119 = tpu.matmul %117, %118, %cst_75 {dimension_numbers = #tpu.dot_dimension_numbers<[1], [0], [0], [1], [0, 0, 1, 1], [], []>} : vector<8x32xbf16>, vector<32x32xbf16>, vector<8x32xf32> -> vector<8x32xf32>
    %c0_76 = arith.constant 0 : index
    %c0_77 = arith.constant 0 : index
    %120 = vector.load %arg10[%c0_76, %c0_77] : memref<1x32xf32, #tpu.memory_space<vmem>>, vector<1x32xf32>
    %121 = vector.broadcast %120 : vector<1x32xf32> to vector<8x32xf32>
    %122 = arith.addf %119, %121 : vector<8x32xf32>
    %123 = arith.addf %1, %122 : vector<8x32xf32>
    %c0_78 = arith.constant 0 : index
    %c0_79 = arith.constant 0 : index
    %124 = vector.load %arg11[%c0_78, %c0_79] : memref<1x32xf32, #tpu.memory_space<vmem>>, vector<1x32xf32>
    %c0_80 = arith.constant 0 : index
    %c0_81 = arith.constant 0 : index
    %125 = vector.load %arg12[%c0_80, %c0_81] : memref<1x32xf32, #tpu.memory_space<vmem>>, vector<1x32xf32>
    %cst_82 = arith.constant dense<0.000000e+00> : vector<8xf32>
    %126 = vector.multi_reduction <add>, %123, %cst_82 [1] : vector<8x32xf32> to vector<8xf32>
    %127 = vector.shape_cast %126 : vector<8xf32> to vector<8x1xf32>
    %cst_83 = arith.constant 3.200000e+01 : f32
    %128 = vector.broadcast %cst_83 : f32 to vector<8x1xf32>
    %129 = arith.divf %127, %128 : vector<8x1xf32>
    %130 = vector.broadcast %129 : vector<8x1xf32> to vector<8x32xf32>
    %131 = arith.subf %123, %130 : vector<8x32xf32>
    %132 = arith.mulf %131, %131 : vector<8x32xf32>
    %cst_84 = arith.constant dense<0.000000e+00> : vector<8xf32>
    %133 = vector.multi_reduction <add>, %132, %cst_84 [1] : vector<8x32xf32> to vector<8xf32>
    %134 = vector.shape_cast %133 : vector<8xf32> to vector<8x1xf32>
    %cst_85 = arith.constant 3.200000e+01 : f32
    %135 = vector.broadcast %cst_85 : f32 to vector<8x1xf32>
    %136 = arith.divf %134, %135 : vector<8x1xf32>
    %cst_86 = arith.constant 9.99999974E-6 : f32
    %137 = vector.broadcast %cst_86 : f32 to vector<8x1xf32>
    %138 = arith.addf %136, %137 : vector<8x1xf32>
    %139 = math.rsqrt %138 : vector<8x1xf32>
    %140 = vector.broadcast %139 : vector<8x1xf32> to vector<8x32xf32>
    %141 = arith.mulf %131, %140 : vector<8x32xf32>
    %142 = vector.broadcast %124 : vector<1x32xf32> to vector<8x32xf32>
    %143 = arith.mulf %141, %142 : vector<8x32xf32>
    %144 = vector.broadcast %125 : vector<1x32xf32> to vector<8x32xf32>
    %145 = arith.addf %143, %144 : vector<8x32xf32>
    %146 = arith.truncf %145 : vector<8x32xf32> to vector<8x32xbf16>
    %c0_87 = arith.constant 0 : index
    %c0_88 = arith.constant 0 : index
    %147 = vector.load %arg13[%c0_87, %c0_88] : memref<32x64xbf16, #tpu.memory_space<vmem>>, vector<32x64xbf16>
    %cst_89 = arith.constant dense<0.000000e+00> : vector<8x64xf32>
    %148 = tpu.matmul %146, %147, %cst_89 {dimension_numbers = #tpu.dot_dimension_numbers<[1], [0], [0], [1], [0, 0, 1, 1], [], []>} : vector<8x32xbf16>, vector<32x64xbf16>, vector<8x64xf32> -> vector<8x64xf32>
    %c0_90 = arith.constant 0 : index
    %c0_91 = arith.constant 0 : index
    %149 = vector.load %arg14[%c0_90, %c0_91] : memref<1x64xf32, #tpu.memory_space<vmem>>, vector<1x64xf32>
    %150 = vector.broadcast %149 : vector<1x64xf32> to vector<8x64xf32>
    %151 = arith.addf %148, %150 : vector<8x64xf32>
    %cst_92 = arith.constant 0.000000e+00 : f32
    %152 = vector.broadcast %cst_92 : f32 to vector<8x64xf32>
    %153 = arith.maximumf %151, %152 : vector<8x64xf32>
    %154 = arith.truncf %153 : vector<8x64xf32> to vector<8x64xbf16>
    %c0_93 = arith.constant 0 : index
    %c0_94 = arith.constant 0 : index
    %155 = vector.load %arg15[%c0_93, %c0_94] : memref<64x32xbf16, #tpu.memory_space<vmem>>, vector<64x32xbf16>
    %cst_95 = arith.constant dense<0.000000e+00> : vector<8x32xf32>
    %156 = tpu.matmul %154, %155, %cst_95 {dimension_numbers = #tpu.dot_dimension_numbers<[1], [0], [0], [1], [0, 0, 1, 1], [], []>} : vector<8x64xbf16>, vector<64x32xbf16>, vector<8x32xf32> -> vector<8x32xf32>
    %c0_96 = arith.constant 0 : index
    %c0_97 = arith.constant 0 : index
    %157 = vector.load %arg16[%c0_96, %c0_97] : memref<1x32xf32, #tpu.memory_space<vmem>>, vector<1x32xf32>
    %158 = vector.broadcast %157 : vector<1x32xf32> to vector<8x32xf32>
    %159 = arith.addf %156, %158 : vector<8x32xf32>
    %160 = arith.addf %145, %159 : vector<8x32xf32>
    %c0_98 = arith.constant 0 : index
    %c0_99 = arith.constant 0 : index
    %161 = vector.load %arg17[%c0_98, %c0_99] : memref<1x32xf32, #tpu.memory_space<vmem>>, vector<1x32xf32>
    %c0_100 = arith.constant 0 : index
    %c0_101 = arith.constant 0 : index
    %162 = vector.load %arg18[%c0_100, %c0_101] : memref<1x32xf32, #tpu.memory_space<vmem>>, vector<1x32xf32>
    %cst_102 = arith.constant dense<0.000000e+00> : vector<8xf32>
    %163 = vector.multi_reduction <add>, %160, %cst_102 [1] : vector<8x32xf32> to vector<8xf32>
    %164 = vector.shape_cast %163 : vector<8xf32> to vector<8x1xf32>
    %cst_103 = arith.constant 3.200000e+01 : f32
    %165 = vector.broadcast %cst_103 : f32 to vector<8x1xf32>
    %166 = arith.divf %164, %165 : vector<8x1xf32>
    %167 = vector.broadcast %166 : vector<8x1xf32> to vector<8x32xf32>
    %168 = arith.subf %160, %167 : vector<8x32xf32>
    %169 = arith.mulf %168, %168 : vector<8x32xf32>
    %cst_104 = arith.constant dense<0.000000e+00> : vector<8xf32>
    %170 = vector.multi_reduction <add>, %169, %cst_104 [1] : vector<8x32xf32> to vector<8xf32>
    %171 = vector.shape_cast %170 : vector<8xf32> to vector<8x1xf32>
    %cst_105 = arith.constant 3.200000e+01 : f32
    %172 = vector.broadcast %cst_105 : f32 to vector<8x1xf32>
    %173 = arith.divf %171, %172 : vector<8x1xf32>
    %cst_106 = arith.constant 9.99999974E-6 : f32
    %174 = vector.broadcast %cst_106 : f32 to vector<8x1xf32>
    %175 = arith.addf %173, %174 : vector<8x1xf32>
    %176 = math.rsqrt %175 : vector<8x1xf32>
    %177 = vector.broadcast %176 : vector<8x1xf32> to vector<8x32xf32>
    %178 = arith.mulf %168, %177 : vector<8x32xf32>
    %179 = vector.broadcast %161 : vector<1x32xf32> to vector<8x32xf32>
    %180 = arith.mulf %178, %179 : vector<8x32xf32>
    %181 = vector.broadcast %162 : vector<1x32xf32> to vector<8x32xf32>
    %182 = arith.addf %180, %181 : vector<8x32xf32>
    %c0_107 = arith.constant 0 : index
    %c0_108 = arith.constant 0 : index
    %c0_109 = arith.constant 0 : index
    %183 = vector.load %arg19[%c0_107, %c0_108, %c0_109] : memref<1x8x32xf32, #tpu.memory_space<vmem>>, vector<1x8x32xf32>
    %184 = vector.shape_cast %183 : vector<1x8x32xf32> to vector<8x32xf32>
    %185 = vector.shape_cast %182 : vector<8x32xf32> to vector<1x8x32xf32>
    tpu.vector_store %arg19[%c0_107, %c0_108, %c0_109], %185 {strides = array<i32>} : memref<1x8x32xf32, #tpu.memory_space<vmem>>, vector<1x8x32xf32>,
    return
  }
  func.func @transform_0(%arg0: i32, %arg1: memref<2xi32, #tpu.memory_space<smem>>) -> (i32, i32, i32) {
    %c0_i32 = arith.constant 0 : i32
    %c0_i32_0 = arith.constant 0 : i32
    %c0_i32_1 = arith.constant 0 : i32
    return %arg0, %c0_i32, %c0_i32_0 : i32, i32, i32
  }
  func.func @transform_1(%arg0: i32, %arg1: memref<2xi32, #tpu.memory_space<smem>>) -> (i32, i32) {
    %c0_i32 = arith.constant 0 : i32
    %c0_i32_0 = arith.constant 0 : i32
    %c0_i32_1 = arith.constant 0 : i32
    return %c0_i32, %c0_i32_0 : i32, i32
  }
  func.func @transform_2(%arg0: i32, %arg1: memref<2xi32, #tpu.memory_space<smem>>) -> (i32, i32) {
    %c0_i32 = arith.constant 0 : i32
    %c0_i32_0 = arith.constant 0 : i32
    %c0_i32_1 = arith.constant 0 : i32
    return %c0_i32, %c0_i32_0 : i32, i32
  }
  func.func @transform_3(%arg0: i32, %arg1: memref<2xi32, #tpu.memory_space<smem>>) -> (i32, i32) {
    %c0_i32 = arith.constant 0 : i32
    %c0_i32_0 = arith.constant 0 : i32
    %c0_i32_1 = arith.constant 0 : i32
    return %c0_i32, %c0_i32_0 : i32, i32
  }
  func.func @transform_4(%arg0: i32, %arg1: memref<2xi32, #tpu.memory_space<smem>>) -> (i32, i32) {
    %c0_i32 = arith.constant 0 : i32
    %c0_i32_0 = arith.constant 0 : i32
    %c0_i32_1 = arith.constant 0 : i32
    return %c0_i32, %c0_i32_0 : i32, i32
  }
  func.func @transform_5(%arg0: i32, %arg1: memref<2xi32, #tpu.memory_space<smem>>) -> (i32, i32) {
    %c0_i32 = arith.constant 0 : i32
    %c0_i32_0 = arith.constant 0 : i32
    %c0_i32_1 = arith.constant 0 : i32
    return %c0_i32, %c0_i32_0 : i32, i32
  }
  func.func @transform_6(%arg0: i32, %arg1: memref<2xi32, #tpu.memory_space<smem>>) -> (i32, i32) {
    %c0_i32 = arith.constant 0 : i32
    %c0_i32_0 = arith.constant 0 : i32
    %c0_i32_1 = arith.constant 0 : i32
    return %c0_i32, %c0_i32_0 : i32, i32
  }
  func.func @transform_7(%arg0: i32, %arg1: memref<2xi32, #tpu.memory_space<smem>>) -> (i32, i32) {
    %c0_i32 = arith.constant 0 : i32
    %c0_i32_0 = arith.constant 0 : i32
    %c0_i32_1 = arith.constant 0 : i32
    return %c0_i32, %c0_i32_0 : i32, i32
  }
  func.func @transform_8(%arg0: i32, %arg1: memref<2xi32, #tpu.memory_space<smem>>) -> (i32, i32) {
    %c0_i32 = arith.constant 0 : i32
    %c0_i32_0 = arith.constant 0 : i32
    %c0_i32_1 = arith.constant 0 : i32
    return %c0_i32, %c0_i32_0 : i32, i32
  }
  func.func @transform_9(%arg0: i32, %arg1: memref<2xi32, #tpu.memory_space<smem>>) -> (i32, i32) {
    %c0_i32 = arith.constant 0 : i32
    %c0_i32_0 = arith.constant 0 : i32
    %c0_i32_1 = arith.constant 0 : i32
    return %c0_i32, %c0_i32_0 : i32, i32
  }
  func.func @transform_10(%arg0: i32, %arg1: memref<2xi32, #tpu.memory_space<smem>>) -> (i32, i32) {
    %c0_i32 = arith.constant 0 : i32
    %c0_i32_0 = arith.constant 0 : i32
    %c0_i32_1 = arith.constant 0 : i32
    return %c0_i32, %c0_i32_0 : i32, i32
  }
  func.func @transform_11(%arg0: i32, %arg1: memref<2xi32, #tpu.memory_space<smem>>) -> (i32, i32) {
    %c0_i32 = arith.constant 0 : i32
    %c0_i32_0 = arith.constant 0 : i32
    %c0_i32_1 = arith.constant 0 : i32
    return %c0_i32, %c0_i32_0 : i32, i32
  }
  func.func @transform_12(%arg0: i32, %arg1: memref<2xi32, #tpu.memory_space<smem>>) -> (i32, i32) {
    %c0_i32 = arith.constant 0 : i32
    %c0_i32_0 = arith.constant 0 : i32
    %c0_i32_1 = arith.constant 0 : i32
    return %c0_i32, %c0_i32_0 : i32, i32
  }
  func.func @transform_13(%arg0: i32, %arg1: memref<2xi32, #tpu.memory_space<smem>>) -> (i32, i32) {
    %c0_i32 = arith.constant 0 : i32
    %c0_i32_0 = arith.constant 0 : i32
    %c0_i32_1 = arith.constant 0 : i32
    return %c0_i32, %c0_i32_0 : i32, i32
  }
  func.func @transform_14(%arg0: i32, %arg1: memref<2xi32, #tpu.memory_space<smem>>) -> (i32, i32) {
    %c0_i32 = arith.constant 0 : i32
    %c0_i32_0 = arith.constant 0 : i32
    %c0_i32_1 = arith.constant 0 : i32
    return %c0_i32, %c0_i32_0 : i32, i32
  }
  func.func @transform_15(%arg0: i32, %arg1: memref<2xi32, #tpu.memory_space<smem>>) -> (i32, i32) {
    %c0_i32 = arith.constant 0 : i32
    %c0_i32_0 = arith.constant 0 : i32
    %c0_i32_1 = arith.constant 0 : i32
    return %c0_i32, %c0_i32_0 : i32, i32
  }
  func.func @transform_16(%arg0: i32, %arg1: memref<2xi32, #tpu.memory_space<smem>>) -> (i32, i32) {
    %c0_i32 = arith.constant 0 : i32
    %c0_i32_0 = arith.constant 0 : i32
    %c0_i32_1 = arith.constant 0 : i32
    return %c0_i32, %c0_i32_0 : i32, i32
  }
  func.func @transform_17(%arg0: i32, %arg1: memref<2xi32, #tpu.memory_space<smem>>) -> (i32, i32, i32) {
    %c0_i32 = arith.constant 0 : i32
    %c0_i32_0 = arith.constant 0 : i32
    %c0_i32_1 = arith.constant 0 : i32
    return %arg0, %c0_i32, %c0_i32_0 : i32, i32, i32
  }
}

</mosaic_0001>

<bundles_post_ra>
// kernel: tpu_custom_call.1
= control target key start
LH: loop header
LB: loop body
LE: loop exit
PB: predicated region body
PF: predicated region fallthrough
CT: control target
= control target key end

     0   :  { %s2327_s27 = smov [#allocation7]   ;;  %s2780_s0 = inlined_call_operand.hbm [shape: s32[2], index: 0, kind: input, shape index: {}]   ;;  %s2781_s1 = inlined_call_operand.vmem [shape: f32[2,8,32], index: 1, kind: input, shape index: {}]   ;;  %s2782_s2 = inlined_call_operand.vmem [shape: bf16[32,32], index: 2, kind: input, shape index: {}]   ;;  %s2783_s3 = inlined_call_operand.hbm [shape: f32[1,32], index: 3, kind: input, shape index: {}]   ;;  %s2784_s4 = inlined_call_operand.vmem [shape: bf16[32,32], index: 4, kind: input, shape index: {}]   ;;  %s2785_s5 = inlined_call_operand.hbm [shape: f32[1,32], index: 5, kind: input, shape index: {}]   ;;  %s2786_s6 = inlined_call_operand.hbm [shape: bf16[32,32], index: 6, kind: input, shape index: {}]   ;;  %s2787_s7 = inlined_call_operand.hbm [shape: f32[1,32], index: 7, kind: input, shape index: {}]   ;;  %s2788_s8 = inlined_call_operand.hbm [shape: bf16[32,32], index: 8, kind: input, shape index: {}]   ;;  %s2789_s9 = inlined_call_operand.hbm [shape: f32[1,32], index: 9, kind: input, shape index: {}]   ;;  %s2790_s10 = inlined_call_operand.vmem [shape: f32[1,32], index: 10, kind: input, shape index: {}]   ;;  %s2791_s11 = inlined_call_operand.vmem [shape: f32[1,32], index: 11, kind: input, shape index: {}]   ;;  %s2792_s12 = inlined_call_operand.vmem [shape: bf16[32,64], index: 12, kind: input, shape index: {}]   ;;  %s2793_s13 = inlined_call_operand.vmem [shape: f32[1,64], index: 13, kind: input, shape index: {}]   ;;  %s2794_s14 = inlined_call_operand.vmem [shape: bf16[64,32], index: 14, kind: input, shape index: {}]   ;;  %s2795_s15 = inlined_call_operand.vmem [shape: f32[1,32], index: 15, kind: input, shape index: {}]   ;;  %s2796_s16 = inlined_call_operand.vmem [shape: f32[1,32], index: 16, kind: input, shape index: {}]   ;;  %s2797_s17 = inlined_call_operand.vmem [shape: f32[1,32], index: 17, kind: input, shape index: {}]   ;;  %s2798_s18 = inlined_call_operand.hbm [shape: f32[2,8,32], index: 18, kind: output, shape index: {}]  }
   0x1   :  { %2808 = sst [smem:[#allocation31_spill]] %s2780_s0 }
   0x2   :  { %2809 = sst [smem:[#allocation32_spill]] %s2781_s1 }
   0x3   :  { %2810 = sst [smem:[#allocation33_spill]] %s2782_s2 }
   0x4   :  { %2811 = sst [smem:[#allocation34_spill]] %s2783_s3 }
   0x5   :  { %2812 = sst [smem:[#allocation35_spill]] %s2785_s5 }
   0x6   :  { %2813 = sst [smem:[#allocation36_spill]] %s2791_s11 }
   0x7   :  { %s2814_s11 = sld [smem:[#allocation31_spill]] }
   0xd   :  { %24 = dma.hbm_to_smem %s2814_s11, 16, %s2327_s27, [#allocation6] }
   0xe   :  { %2289 = dma.done.wait [#allocation6], 16 }
   0xf   :  { %2290 = vsyncadd [#allocation6], 4294967280 }
  0x10   :  { %26 = sfence }
  0x11   :  { %27 = vsyncpa [#allocation9], 0 }
  0x12   :  { %28 = vsyncpa [#allocation12], 0 }
  0x13   :  { %29 = vsyncpa [#allocation15], 0 }
  0x14   :  { %30 = vsyncpa [#allocation18], 0 }
  0x15   :  { %31 = vsyncpa [#allocation10], 0 }
  0x16   :  { %33 = vsyncpa [#allocation10 + $0x1], 0  ;;  %s2443_s30 = smov 0   ;;  %s2445_s0 = smov 0  }
  0x17   :  { %s2447_s19 = smov 0   ;;  %s2449_s1 = smov 0  }
  0x18 LB: > { %2815 = sst [smem:[#allocation26_spill]] %s2313_s30  ;;  %s2464_s11 = sadd.s32 4294967295, %s2325_s1   ;;  %s2325_s1 = sphi %s2449_s1, %s2845_s1   ;;  %s2321_s19 = sphi %s2447_s19, %s2847_s19   ;;  %s2317_s0 = sphi %s2445_s0, %s2849_s0   ;;  %s2313_s30 = sphi %s2443_s30, %s2848_s30  }
  0x19   : > { %2816 = sst [smem:[#allocation27_spill]] %s2321_s19  ;;  %s1742_s20 = sadd.s32 4294967294, %s2325_s1  }
  0x1a   : > { %s2468_s21 = sadd.s32 1, %s2325_s1   ;;  %s408_s22 = sadd.s32 1, %s2321_s19 }
  0x1b   : > { %2817 = sst [smem:[#allocation28_spill]] %s2468_s21  ;;  %s405_s2 = ssub.s32 %s2325_s1, %s2468_s21 }
  0x1c   : > { %p418_p0 = scmp.ne.s32.totalorder %s2321_s19, %s2317_s0  ;;  %p406_p1 = scmp.eq.s32.totalorder %s405_s2, 0 }
  0x1d   : > { %p419_p2 = scmp.eq.s32.totalorder %s2464_s11, 1  ;;  %p424_p3 = scmp.ne.s32.totalorder %s2317_s0, %s2313_s30 }
  0x1e   : > { %p425_p4 = scmp.eq.s32.totalorder %s1742_s20, 1  ;;  %p1743_p7 = scmp.ge.s32.totalorder %s2325_s1, 1 }
  0x1f   : > { %s2479_s23 = scalar_select %p406_p1, %s2321_s19, %s408_s22  }
  0x20   : > { %p2481_p5 = por %p419_p2, %p418_p0  ;;  %p2485_p6 = por %p425_p4, %p424_p3 }
  0x21   : > { %2818 = sst [smem:[#allocation29_spill]] %s2479_s23  ;;  %p432_p8 = scmp.lt.s32.totalorder %s2325_s1, 3 }
  0x22   : > { %s2819_s24 = scalar_select %p2481_p5, 1, 0 }
  0x23   : > { %s2820_s25 = scalar_select %p2485_p6, 1, 0 }
  0x24   : > { %p2804_p9 = scmp.eq.s32.totalorder %s2464_s11, 0  ;;  %p2492_p10 = pnand %p1743_p7, %p432_p8 }
  0x25   : > { %2821 = sst [smem:[#allocation30_spill]] %s2820_s25  ;;  %s2328_s27 = smov [#allocation11]  }
  0x26   : > { %s2822_s26 = scalar_select %p2492_p10, 1, 0 }
  0x27   : > { %s462_s28 = sshll.u32 %s2328_s27, 4  ;;  %p1964_p11 = pneg %p2492_p10  ;;  %s463_s28 = int_to_ptr.vmem [resolvable:$true] %s462_s28 }
  0x28   : > { %s2329_s29 = smov [#allocation14]   ;;  %s2330_s2 = smov [#allocation8]  }
  0x29   : > { %s486_s20 = sshll.u32 %s2329_s29, 4  ;;  %p2500_p12 = pnand %p2804_p9, %p1964_p11  ;;  %s487_s20 = int_to_ptr.vmem [resolvable:$true] %s486_s20 }
  0x2a   : > { %s448_s23 = sshll.u32 %s2330_s2, 4  ;;  %s2102_s27 = scalar_lea.vmem %s463_s28, 16  ;;  %s2504_s23 = int_to_ptr.vmem [resolvable:$true] %s448_s23 }
  0x2b   : > { %p2508_p13 = pneg %p2500_p12  ;;  %p2103_p0 = scmp.ne.s32.totalorder %s463_s28, %s2102_s27 }
  0x2c   : > { %s2109_s29 = scalar_lea.vmem %s463_s28, 32  ;;  %p2110_p3 = scmp.lt.s32.totalorder %s463_s28, %s463_s28 }
  0x2d   : > { %p2105_p1 = pnand %p2103_p0, %p2508_p13  ;;  %p2111_p4 = scmp.lt.s32.totalorder %s2109_s29, %s2102_s27 }
  0x2f   : > { %p2106_p2 = pneg %p2105_p1  ;;  %p2112_p7 = por %p2111_p4, %p2110_p3 }
  0x31   : > { %p2113_p8 = pnand %p2112_p7, %p2106_p2 }
  0x33   : > { %2116 = shalt.err (!%p2113_p8)
}
  0x34   : > { %s2825_s5 = sld [smem:[#allocation35_spill]]  ;;  %s2128_s25 = scalar_lea.vmem %s487_s20, 16 }
  0x35   : > { %p2129_p11 = scmp.ne.s32.totalorder %s487_s20, %s2128_s25  ;;  %s2135_s30 = scalar_lea.vmem %s487_s20, 32 }
  0x36   : > { %p2136_p0 = scmp.lt.s32.totalorder %s487_s20, %s487_s20  ;;  %p2137_p1 = scmp.lt.s32.totalorder %s2135_s30, %s2128_s25 }
  0x37   : > { %p2131_p9 = pnand %p2129_p11, %p2508_p13 }
  0x38   : > { %p2138_p5 = por %p2137_p1, %p2136_p0 }
  0x39   : > { %p2132_p6 = pneg %p2131_p9 }
  0x3a   : > { %1970 = dma.hbm_to_vmem [thread:$0]  (!%p2500_p12), %s2825_s5, 16, %s463_s28, [#allocation12]  }
  0x3b   : > { %p2139_p10 = pnand %p2138_p5, %p2132_p6 }
  0x3d   : > { %2142 = shalt.err (!%p2139_p10)
}
  0x3e   : > { %1976 = dma.hbm_to_vmem [thread:$0]  (!%p2500_p12), %s2787_s7, 16, %s487_s20, [#allocation15]  }
  0x3f   : > { %s2154_s21 = scalar_lea.vmem %s2504_s23, 16  ;;  %s2161_s30 = scalar_lea.vmem %s2504_s23, 32 }
  0x40   : > { %p2155_p2 = scmp.ne.s32.totalorder %s2504_s23, %s2154_s21  ;;  %p2162_p5 = scmp.lt.s32.totalorder %s2504_s23, %s2504_s23 }
  0x41   : > { %p2163_p6 = scmp.lt.s32.totalorder %s2161_s30, %s2154_s21 }
  0x42   : > { %p2157_p9 = pnand %p2155_p2, %p2508_p13 }
  0x43   : > { %p2164_p10 = por %p2163_p6, %p2162_p5 }
  0x44   : > { %p2158_p3 = pneg %p2157_p9 }
  0x46   : > { %p2165_p4 = pnand %p2164_p10, %p2158_p3 }
  0x48   : > { %2168 = shalt.err (!%p2165_p4)
}
  0x49   : > { %s2826_s3 = sld [smem:[#allocation34_spill]]  ;;  %s2331_s20 = smov [#allocation13]  }
  0x4a   : > { %s472_s2 = sshll.u32 %s2331_s20, 4  ;;  %s473_s2 = int_to_ptr.vmem [resolvable:$true] %s472_s2 }
  0x4b   : > { %s2180_s27 = scalar_lea.vmem %s473_s2, 256  ;;  %p2188_p0 = scmp.lt.s32.totalorder %s473_s2, %s473_s2 }
  0x4c   : > { %p2181_p7 = scmp.ne.s32.totalorder %s473_s2, %s2180_s27  ;;  %p2189_p1 = scmp.lt.s32.totalorder %s2180_s27, %s2180_s27 }
  0x4e   : > { %p2183_p8 = pnand %p2181_p7, %p2508_p13  ;;  %p2190_p2 = por %p2189_p1, %p2188_p0 }
  0x4f   : > { %1967 = dma.hbm_to_vmem [thread:$0]  (!%p2500_p12), %s2826_s3, 16, %s2504_s23, [#allocation9]  }
  0x50   : > { %p2184_p11 = pneg %p2183_p8 }
  0x52   : > { %p2191_p9 = pnand %p2190_p2, %p2184_p11 }
  0x54   : > { %2194 = shalt.err (!%p2191_p9)
}
  0x55   : > { %s2332_s29 = smov 64   ;;  %s2333_s21 = smov 4  }
  0x56   : > { %1973 = dma.hbm_to_vmem [thread:$0]  (!%p2500_p12), %s2786_s6, 256, %s473_s2, [#allocation12], %s2332_s29, %s2332_s29, %s2333_s21  }
  0x57   : > { %s2334_s25 = smov [#allocation16]   ;;  %s2335_s20 = smov [#allocation17]  }
  0x58   : > { %s496_s28 = sshll.u32 %s2334_s25, 4  ;;  %s510_s3 = sshll.u32 %s2335_s20, 4  ;;  %s497_s28 = int_to_ptr.vmem [resolvable:$true] %s496_s28  ;;  %s511_s3 = int_to_ptr.vmem [resolvable:$true] %s510_s3 }
  0x59   : > { %s2206_s5 = scalar_lea.vmem %s497_s28, 256  ;;  %p2214_p10 = scmp.lt.s32.totalorder %s497_s28, %s497_s28 }
  0x5a   : > { %p2207_p3 = scmp.ne.s32.totalorder %s497_s28, %s2206_s5  ;;  %p2215_p4 = scmp.lt.s32.totalorder %s2206_s5, %s2206_s5 }
  0x5c   : > { %p2209_p5 = pnand %p2207_p3, %p2508_p13  ;;  %p2216_p7 = por %p2215_p4, %p2214_p10 }
  0x5e   : > { %p2210_p6 = pneg %p2209_p5 }
  0x60   : > { %p2217_p8 = pnand %p2216_p7, %p2210_p6 }
  0x62   : > { %2220 = shalt.err (!%p2217_p8)
}
  0x63   : > { %1979 = dma.hbm_to_vmem [thread:$0]  (!%p2500_p12), %s2788_s8, 256, %s497_s28, [#allocation15], %s2332_s29, %s2332_s29, %s2333_s21  }
  0x64   : > { %s2232_s30 = scalar_lea.vmem %s511_s3, 16  ;;  %s2239_s23 = scalar_lea.vmem %s511_s3, 32 }
  0x65   : > { %p2233_p11 = scmp.ne.s32.totalorder %s511_s3, %s2232_s30  ;;  %p2240_p2 = scmp.lt.s32.totalorder %s511_s3, %s511_s3 }
  0x66   : > { %p2241_p9 = scmp.lt.s32.totalorder %s2239_s23, %s2232_s30 }
  0x67   : > { %p2235_p0 = pnand %p2233_p11, %p2508_p13 }
  0x68   : > { %p2242_p3 = por %p2241_p9, %p2240_p2 }
  0x69   : > { %p2236_p1 = pneg %p2235_p0 }
  0x6b   : > { %p2243_p5 = pnand %p2242_p3, %p2236_p1 }
  0x6d   : > { %2246 = shalt.err (!%p2243_p5)
}
  0x6e   : > { %1982 = dma.hbm_to_vmem [thread:$0]  (!%p2500_p12), %s2789_s9, 16, %s511_s3, [#allocation18]  }
  0x6f   : > { %p2827_p6 = scmp.ne.s32.totalorder %s2822_s26, 0 }
  0x70   : > { %p2828_p10 = scmp.eq.s32.totalorder (!%p2827_p6), %s2464_s11, 0 }
  0x71   : > { %554 = sbr.rel (%p2827_p6) target bundleno = 2533 (0x9e5), region = 88 }
  0x76   : > { %2292 = dma.done.wait (%p2828_p10), [#allocation9], 16   ;;  %p2829_p13 = pmov %p2828_p10 }
  0x77   : > { %p2830_p4 = pmov %p2828_p10 }
  0x78   : > { %2294 = vsyncadd (%p2829_p13), [#allocation9], 4294967280 }
  0x79   : > { %2296 = dma.done.wait (%p2830_p4), [#allocation12], 272   ;;  %p2831_p7 = pmov %p2830_p4 }
  0x7a   : > { %p2832_p8 = pmov %p2830_p4 }
  0x7b   : > { %2298 = vsyncadd (%p2831_p7), [#allocation12], 4294967024 }
  0x7c   : > { %2300 = dma.done.wait (%p2832_p8), [#allocation15], 272   ;;  %p2833_p12 = pmov %p2830_p4 }
  0x7d   : > { %p2834_p11 = pmov %p2830_p4 }
  0x7e   : > { %2302 = vsyncadd (%p2833_p12), [#allocation15], 4294967024 }
  0x7f   : > { %2304 = dma.done.wait (%p2834_p11), [#allocation18], 16   ;;  %p2835_p0 = pmov %p2830_p4 }
  0x80   : > { %p625_p1 = scmp.lt.s32.totalorder %s2464_s11, 1  ;;  %v2336_v0 = vmov 0.0   ;;  %vm2337_vm0 = vmmov 0   ;;  %v2049_v1 = vld [vmem:[%s2784_s4 + $0x8] sm:$0xff]   ;;  %s2836_s28 = sld [smem:[#allocation33_spill]]  ;;  %v2051_v3 = vld [vmem:[%s2784_s4] sm:$0xff]   ;;  %v828_v35 = vlaneseq }
  0x81   : > { %2306 = vsyncadd (%p2835_p0), [#allocation18], 4294967280  ;;  %1846 = vmatprep.subr.bf16.mxu1 %v2336_v0  ;;  %1838 = vmatprep.subr.bf16.mxu0 %v2336_v0  ;;  %s2837_s2 = sld [smem:[#allocation32_spill]]  ;;  %vm655_vm1 = vcmask 261120   ;;  %v1764_v7 = vld [vmem:[#allocation11] ss:$0 sm:$0xff] }
  0x82   : > { %1850 = vmatprep.mubr.msk.bf16.mxu1 %vm2337_vm0, %v2336_v0  ;;  %s626_s3 = scalar_select %p625_p1, %s2464_s11, 1  ;;  %1842 = vmatprep.mubr.msk.bf16.mxu0 %vm2337_vm0, %v2336_v0  ;;  %v1760_v8 = vld [vmem:[#allocation8] ss:$0 sm:$0xff]  ;;  %vm841_vm2 = vcmask 64512   ;;  %v2053_v24 = vld [vmem:[#allocation13 + $0x8] sm:$0xff]   ;;  %v2054_v25 = vld [vmem:[#allocation13] sm:$0xff]  }
  0x83   : > { %1847 = vmatpush3.bf16.msra.mxu1 %v2049_v1  ;;  %s2339_s26 = smov 120   ;;  %s2340_s22 = smov 104   ;;  %v829_v36 = vand.u32 127, %v828_v35  ;;  %v1768_v45 = vld [vmem:[#allocation14] ss:$0 sm:$0xff]  ;;  %vm904_vm4 = vcmask 1043456  }
  0x84   : > { %s1759_s19 = sshll.u32 %s626_s3, 3  ;;  %1848 = vmatprep.subr.bf16.mxu1 %v2336_v0  ;;  %s830_s29 = sld [smem:[#allocation7 + %s2464_s11]]  ;;  %vm1073_vm5 = vcmask 130112   ;;  %vm1199_vm6 = vcmask 195712   ;;  %vm1325_vm7 = vcmask 261312   ;;  %vm1534_vm8 = vcmask 523264  }
  0x85   : > { %s2341_s21 = smov 8   ;;  %s2342_s20 = smov 16  }
  0x86   : > { %v2050_v2 = vld [vmem:[%s2836_s28 + $0x8] sm:$0xff]   ;;  %v2052_v4 = vld [vmem:[%s2836_s28] sm:$0xff]   ;;  %s2343_s27 = smov 24   ;;  %p2841_p9 = scmp.ne.s32.totalorder %s2819_s24, 0 }
  0x87   : > { %s628_s30 = scalar_lea.vmem %s2837_s2, %s1759_s19  ;;  %1839 = vmatpush3.bf16.msra.mxu0 %v2050_v2  ;;  %1849 = vmatpush3.bf16.msra.mxu1 %v2051_v3  ;;  %s2338_s19 = smov 112  }
  0x88   : > { %1840 = vmatprep.subr.bf16.mxu0 %v2336_v0  ;;  %v2603_v5 = vld [vmem:[%s628_s30] sm:$0xff]  ;;  %1862 = vmatprep.subr.bf16.mxu1 %v2336_v0  ;;  %s1799_s30 = sshll.u32 %s2464_s11, 7 }
  0x89   : > { %v631_v6 = vpack.c.bf16 %v2603_v5, %v2603_v5 }
  0x8a   : > { %v831_v37 = vstv %s830_s29 }
  0x8b   : > { %1841 = vmatpush3.bf16.msra.mxu0 %v2052_v4  ;;  %1851 = vmatmul.mubr.msk.bf16.vlgmr.msra.gmra.mxu1 %vm655_vm1, %v631_v6  ;;  %vm2649_vm3 = vcmp.lt.s32.totalorder %v829_v36, %v831_v37 }
  0x8c   : > { %1854 = vmatprep.subr.bf16.mxu0 %v2336_v0  ;;  %1864 = vmatprep.mubr.msk.bf16.mxu1 %vm2337_vm0, %v2336_v0 }
  0x8e   : > { %1843 = vmatmul.mubr.msk.bf16.vlgmr.msra.gmra.mxu0 %vm655_vm1, %v631_v6 }
  0x8f   : > { %1858 = vmatprep.mubr.msk.bf16.mxu0 %vm2337_vm0, %v2336_v0  ;;  %1855 = vmatpush3.bf16.msra.mxu0 %v2053_v24 }
  0x90   : > { %1856 = vmatprep.subr.bf16.mxu0 %v2336_v0 }
  0x93   : > { %1857 = vmatpush3.bf16.msra.mxu0 %v2054_v25 }
  0x94   : > { %1868 = vmatprep.subr.bf16.mxu0 %v2336_v0 }
  0x96   : > { %1859 = vmatmul.mubr.msk.bf16.vlgmr.msra.gmra.mxu0 %vm655_vm1, %v631_v6 }
  0x97   : > { %1870 = vmatprep.mubr.msk.bf16.mxu0 %vm2337_vm0, %v2336_v0 }
 0x14b   : > { %v757_v9 = vpop.f32.mrf.mxu1 }
 0x14c   : > { %v758_v10 = vadd.f32 %v1764_v7, %v757_v9 }
 0x14d   : > { %v1852_v13 = vpop.f32.mrf.mxu1 }
 0x14e   : > { %v693_v11 = vpop.f32.mrf.mxu0  ;;  %763 = vst.msk [vmem:[#allocation3] sm:$0xff] %vm655_vm1, %v758_v10 }
 0x14f   : > { %v694_v12 = vadd.f32 %v1760_v8, %v693_v11  ;;  %v760_v15 = vpop.f32.mrf.mxu1 }
 0x150   : > { %v1844_v14 = vpop.f32.mrf.mxu0 }
 0x151   : > { %699 = vst.msk [vmem:[#allocation2] sm:$0xff] %vm655_vm1, %v694_v12  ;;  %v1853_v17 = vpop.f32.mrf.mxu1 }
 0x152   : > { %v696_v16 = vpop.f32.mrf.mxu0 }
 0x154   : > { %v1845_v18 = vpop.f32.mrf.mxu0 }
 0x155   : > { %v1077_v19 = vld [vmem:[#allocation3] sm:$0xff] }
 0x156   : > { %v1078_v20 = vpack.c.bf16 %v1077_v19, %v1077_v19  ;;  %v821_v46 = vpop.f32.mrf.mxu0 }
 0x157   : > { %v822_v47 = vadd.f32 %v1768_v45, %v821_v46 }
 0x158   : > { %v1075_v21 = vld [vmem:[#allocation2] sm:$0xff]  ;;  %1085 = vrot.lane.b32.xlu1 %v1078_v20, %s2338_s19  ;;  %959 = vrot.lane.b32.xlu0 %v1078_v20, %s2339_s26  ;;  %v846_v22 = vsel %vm841_vm2, %v1078_v20, 0  ;;  %v1860_v48 = vpop.f32.mrf.mxu0 }
 0x159   : > { %v1076_v23 = vpack.c.bf16 %v1075_v21, %v1075_v21  ;;  %1863 = vmatpush3.bf16.xpose.msra.mxu1 %v846_v22  ;;  %827 = vst.msk [vmem:[#allocation4] sm:$0xff] %vm655_vm1, %v822_v47 }
 0x15a   : > { %1874 = vmatprep.subr.bf16.mxu1 %v2336_v0  ;;  %v824_v49 = vpop.f32.mrf.mxu0 }
 0x15c   : > { %1082 = vrot.lane.b32.xlu1 %v1076_v23, %s2338_s19  ;;  %956 = vrot.lane.b32.xlu0 %v1076_v23, %s2339_s26  ;;  %v1861_v50 = vpop.f32.mrf.mxu0 }
 0x160   : > { %1208 = vrot.lane.b32.xlu1 %v1076_v23, %s2340_s22  ;;  %1211 = vrot.lane.b32.xlu0 %v1078_v20, %s2340_s22  ;;  %v953_v51 = vld [vmem:[#allocation4] sm:$0xff] }
 0x161   : > { %1865 = vmatmul.mubr.msk.bf16.vlgmr.msra.gmra.mxu1 %vm841_vm2, %v1076_v23  ;;  %v954_v52 = vpack.c.bf16 %v953_v51, %v953_v51 }
 0x162   : > { %1876 = vmatprep.mubr.msk.bf16.mxu1 %vm2337_vm0, %v2336_v0 }
 0x163   : > { %v906_v53 = vsel %vm904_vm4, %v954_v52, 0 }
 0x164   : > { %1869 = vmatpush3.bf16.msra.mxu0 %v906_v53 }
 0x165   : > { %1880 = vmatprep.subr.bf16.mxu0 %v2336_v0 }
 0x1ca   : > { %v960_v26 = vpop.permute.xlu0 %959  ;;  %v1086_v28 = vpop.permute.xlu1 %1085 }
 0x1cb   : > { %v965_v27 = vsel %vm841_vm2, %v960_v26, 0  ;;  %v1091_v30 = vsel %vm841_vm2, %v1086_v28, 0 }
 0x1cc   : > { %1875 = vmatpush3.bf16.xpose.msra.mxu1 %v965_v27 }
 0x1cd   : > { %1886 = vmatprep.subr.bf16.mxu1 %v2336_v0 }
 0x1ce   : > { %v957_v29 = vpop.permute.xlu0 %956  ;;  %v1083_v32 = vpop.permute.xlu1 %1082 }
 0x1d2   : > { %v1212_v31 = vpop.permute.xlu0 %1211  ;;  %v1209_v34 = vpop.permute.xlu1 %1208 }
 0x1d3   : > { %1877 = vmatmul.mubr.msk.bf16.vlgmr.msra.gmra.mxu1 %vm841_vm2, %v957_v29  ;;  %v1217_v33 = vsel %vm841_vm2, %v1212_v31, 0 }
 0x1d4   : > { %1887 = vmatpush3.bf16.xpose.msra.mxu1 %v1091_v30  ;;  %1888 = vmatprep.mubr.msk.bf16.mxu1 %vm2337_vm0, %v2336_v0 }
 0x1d5   : > { %1898 = vmatprep.subr.bf16.mxu1 %v2336_v0 }
 0x1db   : > { %1889 = vmatmul.mubr.msk.bf16.vlgmr.msra.gmra.mxu1 %vm841_vm2, %v1083_v32 }
 0x1dc   : > { %1899 = vmatpush3.bf16.xpose.msra.mxu1 %v1217_v33  ;;  %1900 = vmatprep.mubr.msk.bf16.mxu1 %vm2337_vm0, %v2336_v0 }
 0x1dd   : > { %1910 = vmatprep.subr.bf16.mxu1 %v2336_v0 }
 0x1e3   : > { %1901 = vmatmul.mubr.msk.bf16.vlgmr.msra.gmra.mxu1 %vm841_vm2, %v1209_v34 }
 0x1e4   : > { %1914 = vmatprep.mubr.msk.bf16.mxu1 %vm2337_vm0, %v2336_v0 }
 0x221   : > { %v882_v39 = vpop.f32.mrf.mxu1 }
 0x222   : > { %v888_v40 = vsel %vm2649_vm3, %v882_v39, -1e+09 }
 0x223   : > { %v1866_v41 = vpop.f32.mrf.mxu1  ;;  %v889_v42 = vsel %vm841_vm2, %v888_v40, -inf }
 0x224   : > { %890 = vmax.xlane.f32.xlu0 %v889_v42 }
 0x225   : > { %v885_v43 = vpop.f32.mrf.mxu1 }
 0x227   : > { %v1867_v44 = vpop.f32.mrf.mxu1 }
 0x293   : > { %v1001_v54 = vpop.f32.mrf.mxu1 }
 0x294   : > { %v1007_v55 = vsel %vm2649_vm3, %v1001_v54, -1e+09 }
 0x295   : > { %v1878_v56 = vpop.f32.mrf.mxu1  ;;  %v1008_v57 = vsel %vm841_vm2, %v1007_v55, -inf }
 0x296   : > { %1009 = vmax.xlane.f32.xlu1 %v1008_v57 }
 0x297   : > { %v1004_v58 = vpop.f32.mrf.mxu1 }
 0x299   : > { %v1879_v59 = vpop.f32.mrf.mxu1 }
 0x29a   : > { %v2055_v59 = vld [vmem:[#allocation16 + $0x8] sm:$0xff]  }
 0x29b   : > { %v1127_v60 = vpop.f32.mrf.mxu1  ;;  %1911 = vmatpush3.bf16.msra.mxu1 %v2055_v59 }
 0x29c   : > { %v1133_v61 = vsel %vm2649_vm3, %v1127_v60, -1e+09  ;;  %1912 = vmatprep.subr.bf16.mxu1 %v2336_v0 }
 0x29d   : > { %v1890_v62 = vpop.f32.mrf.mxu1  ;;  %v1134_v63 = vsel %vm841_vm2, %v1133_v61, -inf }
 0x29e   : > { %1135 = vmax.xlane.f32.xlu0 %v1134_v63 }
 0x29f   : > { %v1130_v1 = vpop.f32.mrf.mxu1 }
 0x2a1   : > { %v1891_v2 = vpop.f32.mrf.mxu1 }
 0x2a3   : > { %v1253_v3 = vpop.f32.mrf.mxu1 }
 0x2a4   : > { %v1259_v4 = vsel %vm2649_vm3, %v1253_v3, -1e+09 }
 0x2a5   : > { %v1902_v6 = vpop.f32.mrf.mxu1  ;;  %v1260_v7 = vsel %vm841_vm2, %v1259_v4, -inf }
 0x2a6   : > { %1261 = vmax.xlane.f32.xlu0 %v1260_v7 }
 0x2a7   : > { %v1256_v8 = vpop.f32.mrf.mxu1 }
 0x2a9   : > { %v1903_v9 = vpop.f32.mrf.mxu1 }
 0x2ad   : > { %v891_v10 = vpop.xlane.xlu0 %890 }
 0x2ae   : > { %v892_v11 = vsub.f32 %v888_v40, %v891_v10 }
 0x2b0   : > { %v893_v12 = vmul.f32 1.442695, %v892_v11 }
 0x2b2   : > { %2063 = vpow2.f32 %v893_v12 }
 0x2bf   : > { %v2064_v13 = vpop.eup %2063 }
 0x2c0   : > { %v895_v14 = vsel %vm841_vm2, %v2064_v13, 0.0 }
 0x2c1   : > { %896 = vadd.xlane.f32.xlu1 %v895_v14 }
 0x2d2   : > { %1021 = vrot.lane.b32.xlu1 %v954_v52, %s2339_s26 }
 0x31f   : > { %v1010_v15 = vpop.xlane.xlu1 %1009 }
 0x320   : > { %v1011_v16 = vsub.f32 %v1007_v55, %v1010_v15 }
 0x322   : > { %v1012_v17 = vmul.f32 1.442695, %v1011_v16 }
 0x324   : > { %2065 = vpow2.f32 %v1012_v17 }
 0x327   : > { %v1136_v18 = vpop.xlane.xlu0 %1135 }
 0x328   : > { %v1137_v19 = vsub.f32 %v1133_v61, %v1136_v18  ;;  %v2056_v61 = vld [vmem:[#allocation16] sm:$0xff]  }
 0x329   : > { %1913 = vmatpush3.bf16.msra.mxu1 %v2056_v61 }
 0x32a   : > { %v1138_v20 = vmul.f32 1.442695, %v1137_v19  ;;  %1926 = vmatprep.subr.bf16.mxu1 %v2336_v0 }
 0x32c   : > { %2067 = vpow2.f32 %v1138_v20 }
 0x32f   : > { %v1262_v21 = vpop.xlane.xlu0 %1261 }
 0x330   : > { %v1263_v22 = vsub.f32 %v1259_v4, %v1262_v21 }
 0x331   : > { %v2066_v23 = vpop.eup %2065 }
 0x332   : > { %v1264_v24 = vmul.f32 1.442695, %v1263_v22  ;;  %v1014_v25 = vsel %vm841_vm2, %v2066_v23, 0.0 }
 0x333   : > { %1015 = vadd.xlane.f32.xlu0 %v1014_v25 }
 0x334   : > { %2069 = vpow2.f32 %v1264_v24 }
 0x339   : > { %v2068_v26 = vpop.eup %2067 }
 0x33a   : > { %v1140_v27 = vsel %vm841_vm2, %v2068_v26, 0.0 }
 0x33b   : > { %1141 = vadd.xlane.f32.xlu1 %v1140_v27  ;;  %v2059_v27 = vld [vmem:[%s2794_s14 + $0x18] sm:$0xff]  }
 0x341   : > { %v2070_v28 = vpop.eup %2069 }
 0x342   : > { %v1266_v29 = vsel %vm841_vm2, %v2070_v28, 0.0 }
 0x343   : > { %1267 = vadd.xlane.f32.xlu0 %v1266_v29 }
 0x34a   : > { %v897_v30 = vpop.xlane.xlu1 %896 }
 0x34b   : > { %2071 = vrcp.f32 %v897_v30 }
 0x34c   : > { %1273 = vrot.lane.b32.xlu1 %v954_v52, %s2340_s22  ;;  %s622_s22 = sand.u32 1, %s2317_s0  }
 0x34d   : > { %s1758_s29 = sshll.u32 %s622_s22, 3  ;;  %s1610_s26 = scalar_lea.sflag [#allocation10], %s622_s22 }
 0x34e   : > { %v1022_v32 = vpop.permute.xlu1 %1021  ;;  %s624_s23 = scalar_lea.vmem [#allocation19], %s1758_s29 }
 0x34f   : > { %v1027_v35 = vsel %vm904_vm4, %v1022_v32, 0  ;;  %s1623_s5 = sshll.u32 %s624_s23, 4  ;;  %s1624_s5 = int_to_ptr.vmem [resolvable:$true] %s1623_s5 }
 0x358   : > { %v2072_v31 = vpop.eup %2071 }
 0x359   : > { %1147 = vrot.lane.b32.xlu0 %v954_v52, %s2338_s19  ;;  %v899_v33 = vmul.f32 %v2072_v31, %v2064_v13  ;;  %v1780_v13 = vld [vmem:[#allocation17] ss:$0 sm:$0xff]  ;;  %s1621_s19 = scalar_lea.hbm %s2798_s18, %s1799_s30 }
 0x35b   : > { %v900_v34 = vpack.c.bf16 %v899_v33, %v899_v33  ;;  %v1784_v33 = vld [vmem:[%s2790_s10] ss:$0 sm:$0xff] }
 0x35d   : > { %1871 = vmatmul.mubr.msk.bf16.vlgmr.msra.gmra.mxu0 %vm841_vm2, %v900_v34 }
 0x35e   : > { %1881 = vmatpush3.bf16.msra.mxu0 %v1027_v35  ;;  %1882 = vmatprep.mubr.msk.bf16.mxu0 %vm2337_vm0, %v2336_v0 }
 0x35f   : > { %1892 = vmatprep.subr.bf16.mxu0 %v2336_v0 }
 0x3bc   : > { %v1016_v36 = vpop.xlane.xlu0 %1015 }
 0x3bd   : > { %2073 = vrcp.f32 %v1016_v36 }
 0x3c4   : > { %v1142_v37 = vpop.xlane.xlu1 %1141 }
 0x3c5   : > { %2075 = vrcp.f32 %v1142_v37 }
 0x3c8   : > { %v1274_v46 = vpop.permute.xlu1 %1273 }
 0x3c9   : > { %v1279_v48 = vsel %vm904_vm4, %v1274_v46, 0 }
 0x3ca   : > { %v2074_v38 = vpop.eup %2073 }
 0x3cb   : > { %v1018_v39 = vmul.f32 %v2074_v38, %v2066_v23 }
 0x3cc   : > { %v1268_v40 = vpop.xlane.xlu0 %1267 }
 0x3cd   : > { %2077 = vrcp.f32 %v1268_v40  ;;  %v1019_v41 = vpack.c.bf16 %v1018_v39, %v1018_v39  ;;  %v2061_v39 = vld [vmem:[%s2794_s14 + $0x8] sm:$0xff]   ;;  %v2062_v40 = vld [vmem:[%s2794_s14] sm:$0xff]  }
 0x3cf   : > { %1883 = vmatmul.mubr.msk.bf16.vlgmr.msra.gmra.mxu0 %vm841_vm2, %v1019_v41  ;;  %v1786_v41 = vld [vmem:[%s2793_s13] ss:$0 sm:$0xff] }
 0x3d0   : > { %v1148_v42 = vpop.permute.xlu0 %1147  ;;  %1894 = vmatprep.mubr.msk.bf16.mxu0 %vm2337_vm0, %v2336_v0 }
 0x3d1   : > { %v1153_v43 = vsel %vm904_vm4, %v1148_v42, 0 }
 0x3d2   : > { %v2076_v44 = vpop.eup %2075  ;;  %1893 = vmatpush3.bf16.msra.mxu0 %v1153_v43 }
 0x3d3   : > { %1904 = vmatprep.subr.bf16.mxu0 %v2336_v0  ;;  %v1144_v45 = vmul.f32 %v2076_v44, %v2068_v26  ;;  %v2057_v26 = vld [vmem:[%s2792_s12 + $0x8] sm:$0xff]  }
 0x3d5   : > { %v1145_v47 = vpack.c.bf16 %v1144_v45, %v1144_v45 }
 0x3d7   : > { %1895 = vmatmul.mubr.msk.bf16.vlgmr.msra.gmra.mxu0 %vm841_vm2, %v1145_v47 }
 0x3d8   : > { %1905 = vmatpush3.bf16.msra.mxu0 %v1279_v48  ;;  %1906 = vmatprep.mubr.msk.bf16.mxu0 %vm2337_vm0, %v2336_v0 }
 0x3d9   : > { %1918 = vmatprep.subr.bf16.mxu0 %v2336_v0 }
 0x3da   : > { %v2078_v49 = vpop.eup %2077 }
 0x3db   : > { %v1270_v50 = vmul.f32 %v2078_v49, %v2070_v28  ;;  %v2060_v28 = vld [vmem:[%s2794_s14 + $0x10] sm:$0xff]  }
 0x3dd   : > { %v1271_v51 = vpack.c.bf16 %v1270_v50, %v1270_v50 }
 0x3df   : > { %1907 = vmatmul.mubr.msk.bf16.vlgmr.msra.gmra.mxu0 %vm841_vm2, %v1271_v51 }
 0x3e0   : > { %1922 = vmatprep.mubr.msk.bf16.mxu0 %vm2337_vm0, %v2336_v0  ;;  %1919 = vmatpush3.bf16.msra.mxu0 %v2057_v26 }
 0x3e1   : > { %1920 = vmatprep.subr.bf16.mxu0 %v2336_v0 }
 0x41d   : > { %v942_v52 = vpop.f32.mrf.mxu0 }
 0x41e   : > { %948 = vst.msk [vmem:[#allocation5] sm:$0xff] %vm841_vm2, %v942_v52 }
 0x41f   : > { %v1872_v53 = vpop.f32.mrf.mxu0 }
 0x421   : > { %v945_v54 = vpop.f32.mrf.mxu0 }
 0x423   : > { %v1873_v55 = vpop.f32.mrf.mxu0 }
 0x48f   : > { %v1063_v56 = vpop.f32.mrf.mxu0 }
 0x490   : > { %1070 = vrot.lane.b32.xlu1 %v1063_v56, %s2341_s21  ;;  %s2247_s21 = scalar_lea.vmem %s1624_s5, 128 }
 0x491   : > { %v1884_v57 = vpop.f32.mrf.mxu0  ;;  %p2248_p2 = scmp.ne.s32.totalorder %s1624_s5, %s2247_s21 }
 0x493   : > { %v1066_v58 = vpop.f32.mrf.mxu0  ;;  %p2249_p3 = pnand %p2248_p2, %p2841_p9 }
 0x495   : > { %v1885_v60 = vpop.f32.mrf.mxu0  ;;  %p2250_p5 = pneg %p2249_p3 }
 0x497   : > { %v1189_v62 = vpop.f32.mrf.mxu0 }
 0x498   : > { %1196 = vrot.lane.b32.xlu0 %v1189_v62, %s2342_s20  ;;  %s2344_s20 = smov [#allocation19]  }
 0x499   : > { %v1896_v63 = vpop.f32.mrf.mxu0 }
 0x49b   : > { %v1192_v1 = vpop.f32.mrf.mxu0 }
 0x49d   : > { %v1897_v2 = vpop.f32.mrf.mxu0 }
 0x49e   : > { %v1796_v2 = vld [vmem:[%s2796_s16] ss:$0 sm:$0xff] }
 0x49f   : > { %v1315_v3 = vpop.f32.mrf.mxu0 }
 0x4a0   : > { %1322 = vrot.lane.b32.xlu1 %v1315_v3, %s2343_s27  ;;  %s2840_s27 = sld [smem:[#allocation36_spill]] }
 0x4a1   : > { %v1908_v4 = vpop.f32.mrf.mxu0 }
 0x4a2   : > { %v1797_v4 = vld [vmem:[%s2797_s17] ss:$0 sm:$0xff] }
 0x4a3   : > { %v1318_v6 = vpop.f32.mrf.mxu0 }
 0x4a5   : > { %v1909_v7 = vpop.f32.mrf.mxu0 }
 0x4a6   : > { %v1785_v35 = vld [vmem:[%s2840_s27] ss:$0 sm:$0xff]  ;;  %s2251_s27 = sshll.u32 %s2344_s20, 4  ;;  %s2252_s27 = int_to_ptr.vmem [resolvable:$false] %s2251_s27 }
 0x4a7   : > { %s2253_s11 = scalar_lea.vmem %s2252_s27, 256  ;;  %p2254_p6 = scmp.lt.s32.totalorder %s1624_s5, %s2252_s27 }
 0x4a8   : > { %p2255_p10 = scmp.lt.s32.totalorder %s2253_s11, %s2247_s21 }
 0x4aa   : > { %p2256_p13 = por %p2255_p10, %p2254_p6 }
 0x4ac   : > { %p2257_p4 = pnand %p2256_p13, %p2250_p5 }
 0x502   : > { %v1071_v8 = vpop.permute.xlu1 %1070 }
 0x503   : > { %1074 = vst.msk [vmem:[#allocation5] sm:$0xff] %vm1073_vm5, %v1071_v8 }
 0x50a   : > { %v1197_v9 = vpop.permute.xlu0 %1196 }
 0x50b   : > { %1200 = vst.msk [vmem:[#allocation5] sm:$0xff] %vm1199_vm6, %v1197_v9 }
 0x512   : > { %v1323_v10 = vpop.permute.xlu1 %1322 }
 0x513   : > { %1326 = vst.msk [vmem:[#allocation5] sm:$0xff] %vm1325_vm7, %v1323_v10 }
 0x51a   : > { %v1327_v11 = vld [vmem:[#allocation5] sm:$0xff] }
 0x51b   : > { %v1328_v12 = vpack.c.bf16 %v1327_v11, %v1327_v11 }
 0x51d   : > { %1915 = vmatmul.mubr.msk.bf16.vlgmr.msra.gmra.mxu1 %vm655_vm1, %v1328_v12 }
 0x51e   : > { %1934 = vmatprep.mubr.msk.bf16.mxu1 %vm2337_vm0, %v2336_v0  ;;  %1927 = vmatpush3.bf16.msra.mxu1 %v2059_v27 }
 0x51f   : > { %1928 = vmatprep.subr.bf16.mxu1 %v2336_v0 }
 0x522   : > { %1929 = vmatpush3.bf16.msra.mxu1 %v2060_v28 }
 0x523   : > { %1930 = vmatprep.subr.bf16.mxu1 %v2336_v0 }
 0x526   : > { %1931 = vmatpush3.bf16.msra.mxu1 %v2061_v39 }
 0x527   : > { %1932 = vmatprep.subr.bf16.mxu1 %v2336_v0  ;;  %v1790_v0 = vld [vmem:[%s2795_s15] ss:$0 sm:$0xff] }
 0x52a   : > { %1933 = vmatpush3.bf16.msra.mxu1 %v2062_v40 }
 0x5dd   : > { %v1389_v14 = vpop.f32.mrf.mxu1 }
 0x5de   : > { %v1390_v15 = vadd.f32 %v1780_v13, %v1389_v14 }
 0x5df   : > { %v1916_v16 = vpop.f32.mrf.mxu1 }
 0x5e0   : > { %v1395_v17 = vadd.f32 %v1390_v15, %v2603_v5  ;;  %v2058_v5 = vld [vmem:[%s2792_s12] sm:$0xff]  }
 0x5e1   : > { %v1392_v18 = vpop.f32.mrf.mxu1  ;;  %1921 = vmatpush3.bf16.msra.mxu0 %v2058_v5 }
 0x5e2   : > { %v1398_v19 = vsel %vm655_vm1, %v1395_v17, 0.0 }
 0x5e3   : > { %1399 = vadd.xlane.f32.xlu0 %v1398_v19  ;;  %v1917_v20 = vpop.f32.mrf.mxu1 }
 0x66c   : > { %v1400_v21 = vpop.xlane.xlu0 %1399 }
 0x66d   : > { %v1402_v22 = vmul.f32 0.03125, %v1400_v21 }
 0x66f   : > { %v1403_v23 = vsub.f32 %v1395_v17, %v1402_v22 }
 0x671   : > { %v1404_v24 = vmul.f32 %v1403_v23, %v1403_v23 }
 0x673   : > { %v1405_v25 = vsel %vm655_vm1, %v1404_v24, 0.0 }
 0x674   : > { %1406 = vadd.xlane.f32.xlu1 %v1405_v25 }
 0x6fd   : > { %v1407_v29 = vpop.xlane.xlu1 %1406 }
 0x6fe   : > { %v1408_v30 = vmul.f32 0.03125, %v1407_v29 }
 0x700   : > { %v1409_v31 = vadd.f32 1e-05, %v1408_v30 }
 0x702   : > { %2079 = vrsqrt.f32 %v1409_v31 }
 0x70f   : > { %v2080_v32 = vpop.eup %2079 }
 0x710   : > { %v1411_v34 = vmul.f32 %v2080_v32, %v1403_v23 }
 0x712   : > { %v1418_v36 = vmul.f32 %v1784_v33, %v1411_v34 }
 0x714   : > { %v1425_v37 = vadd.f32 %v1785_v35, %v1418_v36 }
 0x716   : > { %v1426_v38 = vpack.c.bf16 %v1425_v37, %v1425_v37 }
 0x718   : > { %1923 = vmatmul.mubr.msk.bf16.vlgmr.msra.gmra.mxu0 %vm655_vm1, %v1426_v38 }
 0x7d8   : > { %v1487_v42 = vpop.f32.mrf.mxu0 }
 0x7d9   : > { %v1488_v43 = vadd.f32 %v1786_v41, %v1487_v42 }
 0x7da   : > { %v1924_v44 = vpop.f32.mrf.mxu0 }
 0x7db   : > { %v1493_v45 = vmax.f32 %v1488_v43, 0.0 }
 0x7dc   : > { %v1490_v46 = vpop.f32.mrf.mxu0 }
 0x7dd   : > { %v1494_v47 = vpack.c.bf16 %v1493_v45, %v1493_v45 }
 0x7de   : > { %v1925_v48 = vpop.f32.mrf.mxu0 }
 0x7df   : > { %1935 = vmatmul.mubr.msk.bf16.vlgmr.msra.gmra.mxu1 %vm1534_vm8, %v1494_v47 }
 0x89f   : > { %v1572_v49 = vpop.f32.mrf.mxu1 }
 0x8a0   : > { %v1573_v50 = vadd.f32 %v1790_v0, %v1572_v49 }
 0x8a1   : > { %v1936_v51 = vpop.f32.mrf.mxu1 }
 0x8a2   : > { %v1578_v52 = vadd.f32 %v1573_v50, %v1425_v37 }
 0x8a3   : > { %v1575_v53 = vpop.f32.mrf.mxu1 }
 0x8a4   : > { %v1581_v54 = vsel %vm655_vm1, %v1578_v52, 0.0 }
 0x8a5   : > { %1582 = vadd.xlane.f32.xlu0 %v1581_v54  ;;  %v1937_v55 = vpop.f32.mrf.mxu1 }
 0x92e   : > { %v1583_v56 = vpop.xlane.xlu0 %1582 }
 0x92f   : > { %v1584_v57 = vmul.f32 0.03125, %v1583_v56 }
 0x931   : > { %v1585_v58 = vsub.f32 %v1578_v52, %v1584_v57 }
 0x933   : > { %v1586_v59 = vmul.f32 %v1585_v58, %v1585_v58 }
 0x935   : > { %v1587_v60 = vsel %vm655_vm1, %v1586_v59, 0.0 }
 0x936   : > { %1588 = vadd.xlane.f32.xlu0 %v1587_v60 }
 0x9bf   : > { %v1589_v61 = vpop.xlane.xlu0 %1588 }
 0x9c0   : > { %v1590_v62 = vmul.f32 0.03125, %v1589_v61 }
 0x9c2   : > { %v1591_v63 = vadd.f32 1e-05, %v1590_v62 }
 0x9c4   : > { %2081 = vrsqrt.f32 %v1591_v63 }
 0x9d1   : > { %v2082_v1 = vpop.eup %2081 }
 0x9d2   : > { %v1593_v3 = vmul.f32 %v2082_v1, %v1585_v58 }
 0x9d4   : > { %v1600_v6 = vmul.f32 %v1796_v2, %v1593_v3 }
 0x9d6   : > { %v1607_v7 = vadd.f32 %v1797_v4, %v1600_v6 }
 0x9d8   : > { %1608 = vst.msk [vmem:[%s624_s23] sm:$0xff] %vm655_vm1, %v1607_v7 }
 0x9d9   : > { %2260 = shalt.err (!%p2257_p4)
}
 0x9da   : > { %s2261_s29 = scalar_lea.hbm %s1621_s19, 128  ;;  %s2265_s30 = scalar_lea.hbm %s2798_s18, 256 }
 0x9db   : > { %p2262_p7 = scmp.ne.s32.totalorder %s1621_s19, %s2261_s29  ;;  %p2266_p11 = scmp.lt.s32.totalorder %s1621_s19, %s2798_s18 }
 0x9dc   : > { %p2267_p0 = scmp.lt.s32.totalorder %s2265_s30, %s2261_s29 }
 0x9dd   : > { %p2263_p8 = pnand %p2262_p7, %p2841_p9 }
 0x9de   : > { %p2268_p1 = por %p2267_p0, %p2266_p11 }
 0x9df   : > { %p2264_p12 = pneg %p2263_p8 }
 0x9e1   : > { %p2269_p2 = pnand %p2268_p1, %p2264_p12 }
 0x9e3   : > { %2272 = shalt.err (!%p2269_p2)
}
 0x9e4   : > { %1962 = dma.vmem_to_hbm [thread:$0]  (%p2841_p9), %s1624_s5, 128, %s1621_s19, %s1610_s26  }
 0x9e5 PF: > { %s2842_s3 = sld [smem:[#allocation26_spill]]  ;;  %p1999_p3 = scmp.ge.s32.totalorder %s2325_s1, 2 }
 0x9e6   : > { %s2843_s21 = sld [smem:[#allocation30_spill]] }
 0x9eb   : > { %s1635_s20 = sand.u32 1, %s2842_s3  }
 0x9ec   : > { %p2844_p5 = scmp.ne.s32.totalorder %s2843_s21, 0  ;;  %s1636_s27 = scalar_lea.sflag [#allocation10], %s1635_s20 }
 0x9ee   : > { %p1984_p6 = pnand %p1999_p3, %p2844_p5 }
 0x9f0   : > { %p1985_p10 = pneg %p1984_p6 }
 0x9f2   : > { %2308 = dma.done.wait (%p1985_p10), %s1636_s27, 128  }
 0x9f3   : > { %2310 = vsyncadd (%p1985_p10), %s1636_s27, 4294967168  ;;  %s2845_s1 = sld [smem:[#allocation28_spill]]  ;;  %s2848_s30 = smov %s2317_s0 }
 0x9f4   : > { %s2846_s11 = sld [smem:[#allocation27_spill]] }
 0x9f5   : > { %s2847_s19 = sld [smem:[#allocation29_spill]] }
 0x9f9   : > { %p36_p13 = scmp.ge.s32.totalorder %s2845_s1, 4  }
 0x9fa   : > { %s2849_s0 = smov %s2846_s11 }
 0x9fb   :  { %38 = sbr.rel (!%p36_p13) target bundleno = 24 (0x18), region = 148 }
 0xa00   :  { %1641 = vsyncpa [#allocation9], 1 }
 0xa01   :  { %1643 = vsyncpa [#allocation9 + $0x1], 1 }
 0xa02   :  { %1644 = vsyncpa [#allocation12], 1 }
 0xa03   :  { %1645 = vsyncpa [#allocation15], 1 }
 0xa04   :  { %1646 = vsyncpa [#allocation18], 1 }
 0xa05   :  { %1647 = vsyncpa [#allocation10], 1 }
 0xa06   :  { %1649 = vsyncpa [#allocation10 + $0x1], 1 }

</bundles_post_ra>
